<compile_context>
chip_gen: v5e
topology: v5e:2x2
jax: 0.10.0
libtpu: 0.0.40
codegen_flags: <defaults>
</compile_context>

<pallas_src>
import functools

import jax
import jax.numpy as jnp
from jax.experimental import pallas as pl
from jax.experimental.pallas import tpu as pltpu


def _round_up(x: int, m: int) -> int:
    return (x + m - 1) // m * m


def _pick_tile_rows(h: int, wp: int, cop: int, budget_bytes: int = 128 * 1024) -> int:
    """Largest divisor of h whose f32 accumulator (tile_rows*wp, cop) fits budget."""
    best = 1
    for th in range(1, h + 1):
        if h % th == 0 and th * wp * cop * 4 <= budget_bytes:
            best = th
    return best


def _conv3x3_kernel(x_ref, w_ref, b_ref, out_ref, *, wp: int, tile_rows: int):
    # x_ref:   (M_ext, Cin_p)   halo'd, flattened (rows x padded-width) window
    # w_ref:   (9, Cin_p, Cout_p) per-tap weights (VMEM-resident across steps)
    # b_ref:   (1, Cout_p)      f32 bias
    # out_ref: (M, Cout_p)      M = tile_rows * wp (flattened rows x padded width)
    m = tile_rows * wp
    acc = None
    # Hoist the column (kw) shift out of the kh loop: only kw in {1,2} are
    # sublane-misaligned (<=2 shifted tile copies per step); the kh row offsets
    # (kh*wp) are multiples of 8, i.e. free aligned sub-slices.
    for kw in range(3):
        x_kw = x_ref[pl.ds(kw, m + 2 * wp), :]          # static start; kw=0 aligned
        for kh in range(3):
            tap = kh * 3 + kw
            xs = x_kw[kh * wp: kh * wp + m, :]          # 8-aligned row offset
            part = jnp.dot(xs, w_ref[tap], preferred_element_type=jnp.float32)
            if acc is None:
                acc = part + b_ref[...]                 # init acc with the bias
            else:
                acc = acc + part                        # pure dot-accumulate chain
    out_ref[...] = jnp.maximum(acc, 0.0).astype(out_ref.dtype)


def conv_bottleneck(dec: jax.Array, enc: jax.Array,
                    weight: jax.Array, bias: jax.Array) -> jax.Array:
    """ConvBottleneck forward (NCHW in / NCHW out, matching the PyTorch module)."""
    N, Cd, H, W = dec.shape
    Ne, Ce, He, We_ = enc.shape
    assert (N, H, W) == (Ne, He, We_), "dec/enc must share batch & spatial dims"
    Cout, Cin, kh_, kw_ = weight.shape
    assert Cin == Cd + Ce and (kh_, kw_) == (3, 3)
    dtype = dec.dtype
    itemsize = dtype.itemsize

    # Lane-dense channel padding (zero channels are inert).
    Cip = _round_up(Cin, 128)
    Cop = _round_up(Cout, 128)

    Hp = H + 2
    Wp = _round_up(W + 2, 8)              # conv border + round to 8 -> aligned rows
    tile_rows = _pick_tile_rows(H, Wp, Cop)
    nR = H // tile_rows
    M = tile_rows * Wp
    M_ext = (tile_rows + 2) * Wp + 8      # +8 flat slack keeps the last tap in-bounds

    # --- prep pass (single fused HBM pass): NCHW -> NHWC, concat channels,
    #     zero-pad border/width/channels, flatten rows*width, gather halo windows.
    x = jnp.concatenate([dec, enc], axis=1)                       # (N, Cin, H, W)
    x = jnp.transpose(x, (0, 2, 3, 1))                            # (N, H, W, Cin)
    x = jnp.pad(x, ((0, 0), (1, 1), (1, Wp - W - 1), (0, Cip - Cin)))
    x = x.reshape(N, Hp * Wp, Cip)
    x = jnp.pad(x, ((0, 0), (0, 8), (0, 0)))                      # flat slack rows
    starts = jnp.arange(nR, dtype=jnp.int32) * (tile_rows * Wp)
    win_idx = starts[:, None] + jnp.arange(M_ext, dtype=jnp.int32)[None, :]
    x_win = jnp.take(x, win_idx, axis=1)                          # (N, nR, M_ext, Cip)

    # Per-tap weights (9, Cip, Cop); padded rows/cols are zero -> inert.
    w_taps = jnp.transpose(weight, (2, 3, 1, 0)).reshape(9, Cin, Cout)
    w_taps = jnp.pad(w_taps, ((0, 0), (0, Cip - Cin), (0, Cop - Cout))).astype(dtype)
    b2 = jnp.pad(bias.astype(jnp.float32), (0, Cop - Cout)).reshape(1, Cop)

    kernel = functools.partial(_conv3x3_kernel, wp=Wp, tile_rows=tile_rows)

    # Scoped-VMEM budget: double-buffered input/output blocks + resident weights + acc.
    x_blk = M_ext * Cip * itemsize
    o_blk = M * Cop * itemsize
    w_bytes = 9 * Cip * Cop * w_taps.dtype.itemsize
    acc_bytes = M * Cop * 4
    vmem_need = 2 * x_blk + 2 * o_blk + 2 * w_bytes + acc_bytes + (2 << 20)
    vmem_limit = int(min(100 << 20, max(16 << 20, 2 * vmem_need)))

    out = pl.pallas_call(
        kernel,
        out_shape=jax.ShapeDtypeStruct((N, H * Wp, Cop), dtype),
        grid_spec=pltpu.PrefetchScalarGridSpec(
            num_scalar_prefetch=0,
            grid=(N, nR),
            in_specs=[
                pl.BlockSpec((None, None, M_ext, Cip), lambda b, r: (b, r, 0, 0)),
                pl.BlockSpec((9, Cip, Cop), lambda b, r: (0, 0, 0)),
                pl.BlockSpec((1, Cop), lambda b, r: (0, 0)),
            ],
            out_specs=pl.BlockSpec((None, M, Cop), lambda b, r: (b, r, 0)),
        ),
        compiler_params=pltpu.CompilerParams(
            dimension_semantics=("parallel", "parallel"),   # batch x row-tiles
            vmem_limit_bytes=vmem_limit,
        ),
    )(x_win, w_taps, b2)

    # --- output fixup (single fused pass): drop padded cols/channels, back to NCHW.
    out = out.reshape(N, H, Wp, Cop)[:, :, :W, :Cout]
    return jnp.transpose(out, (0, 3, 1, 2))


if __name__ == "__main__":
    key = jax.random.PRNGKey(0)
    k_dec, k_enc, k_w, k_b = jax.random.split(key, 4)

    # Small deterministic shapes: dec/enc each (N=2, C=4, H=16, W=16),
    # ConvBottleneck(in_channels=8, out_channels=8).
    N, Cd, Ce, H, W = 2, 4, 4, 16, 16
    Cin, Cout = Cd + Ce, 8

    dec = jax.random.normal(k_dec, (N, Cd, H, W), dtype=jnp.float32)
    enc = jax.random.normal(k_enc, (N, Ce, H, W), dtype=jnp.float32)
    bound = 1.0 / (Cin * 9) ** 0.5   # PyTorch Conv2d default init range
    weight = jax.random.uniform(k_w, (Cout, Cin, 3, 3), jnp.float32, -bound, bound)
    bias = jax.random.uniform(k_b, (Cout,), jnp.float32, -bound, bound)

    fn = jax.jit(conv_bottleneck)
    out = jax.block_until_ready(fn(dec, enc, weight, bias))

    # Pure-JAX reference: concat -> conv2d(pad=1) -> bias -> relu.
    x = jnp.concatenate([dec, enc], axis=1)
    ref = jax.lax.conv_general_dilated(
        x, weight, window_strides=(1, 1), padding=((1, 1), (1, 1)),
        dimension_numbers=("NCHW", "OIHW", "NCHW"))
    ref = jnp.maximum(ref + bias.reshape(1, Cout, 1, 1), 0.0)

    assert out.shape == ref.shape and out.dtype == ref.dtype
    max_err = float(jnp.max(jnp.abs(out - ref)))
    assert jnp.allclose(out, ref, atol=1e-4, rtol=1e-4), f"max_err={max_err}"
    print("KERNEL_OK")
</pallas_src>

<mosaic_0001>
module attributes {stable_mosaic.version = 11 : i64} {
  func.func @_conv3x3_kernel(%arg0: i32, %arg1: i32, %arg2: memref<1x1x248x128xf32, #tpu.memory_space<vmem>>, %arg3: memref<9x128x128xf32, #tpu.memory_space<vmem>>, %arg4: memref<1x128xf32, #tpu.memory_space<vmem>>, %arg5: memref<1x192x128xf32, #tpu.memory_space<vmem>>) attributes {dimension_semantics = [#tpu.dimension_semantics<parallel>, #tpu.dimension_semantics<parallel>], iteration_bounds = array<i64: 2, 2>, scalar_prefetch = 0 : i64, scratch_operands = 0 : i64, tpu.core_type = #tpu.core_type<tc>, window_params = [{transform_indices = @transform_0, window_bounds = array<i64: 1, 1, 248, 128>}, {pipeline_mode = #tpu.pipeline_mode<synchronous>, transform_indices = @transform_1, window_bounds = array<i64: 9, 128, 128>}, {pipeline_mode = #tpu.pipeline_mode<synchronous>, transform_indices = @transform_2, window_bounds = array<i64: 1, 128>}, {transform_indices = @transform_3, window_bounds = array<i64: 1, 192, 128>}]} {
    %c0 = arith.constant 0 : index
    %c0_0 = arith.constant 0 : index
    %c0_1 = arith.constant 0 : index
    %c0_2 = arith.constant 0 : index
    %0 = vector.load %arg2[%c0, %c0_0, %c0_1, %c0_2] : memref<1x1x248x128xf32, #tpu.memory_space<vmem>>, vector<1x1x240x128xf32>
    %1 = vector.shape_cast %0 : vector<1x1x240x128xf32> to vector<240x128xf32>
    %2 = vector.extract_strided_slice %1 {offsets = [0, 0], sizes = [192, 128], strides = [1, 1]} : vector<240x128xf32> to vector<192x128xf32>
    %c0_3 = arith.constant 0 : index
    %c0_4 = arith.constant 0 : index
    %c0_5 = arith.constant 0 : index
    %3 = vector.load %arg3[%c0_3, %c0_4, %c0_5] : memref<9x128x128xf32, #tpu.memory_space<vmem>>, vector<1x128x128xf32>
    %4 = vector.shape_cast %3 : vector<1x128x128xf32> to vector<128x128xf32>
    %cst = arith.constant dense<0.000000e+00> : vector<192x128xf32>
    %5 = tpu.matmul %2, %4, %cst {dimension_numbers = #tpu.dot_dimension_numbers<[1], [0], [0], [1], [0, 0, 1, 1], [], []>} : vector<192x128xf32>, vector<128x128xf32>, vector<192x128xf32> -> vector<192x128xf32>
    %c0_6 = arith.constant 0 : index
    %c0_7 = arith.constant 0 : index
    %6 = vector.load %arg4[%c0_6, %c0_7] : memref<1x128xf32, #tpu.memory_space<vmem>>, vector<1x128xf32>
    %7 = vector.broadcast %6 : vector<1x128xf32> to vector<192x128xf32>
    %8 = arith.addf %5, %7 : vector<192x128xf32>
    %9 = vector.extract_strided_slice %1 {offsets = [24, 0], sizes = [192, 128], strides = [1, 1]} : vector<240x128xf32> to vector<192x128xf32>
    %c3 = arith.constant 3 : index
    %c0_8 = arith.constant 0 : index
    %c0_9 = arith.constant 0 : index
    %10 = vector.load %arg3[%c3, %c0_8, %c0_9] : memref<9x128x128xf32, #tpu.memory_space<vmem>>, vector<1x128x128xf32>
    %11 = vector.shape_cast %10 : vector<1x128x128xf32> to vector<128x128xf32>
    %cst_10 = arith.constant dense<0.000000e+00> : vector<192x128xf32>
    %12 = tpu.matmul %9, %11, %cst_10 {dimension_numbers = #tpu.dot_dimension_numbers<[1], [0], [0], [1], [0, 0, 1, 1], [], []>} : vector<192x128xf32>, vector<128x128xf32>, vector<192x128xf32> -> vector<192x128xf32>
    %13 = arith.addf %8, %12 : vector<192x128xf32>
    %14 = vector.extract_strided_slice %1 {offsets = [48, 0], sizes = [192, 128], strides = [1, 1]} : vector<240x128xf32> to vector<192x128xf32>
    %c6 = arith.constant 6 : index
    %c0_11 = arith.constant 0 : index
    %c0_12 = arith.constant 0 : index
    %15 = vector.load %arg3[%c6, %c0_11, %c0_12] : memref<9x128x128xf32, #tpu.memory_space<vmem>>, vector<1x128x128xf32>
    %16 = vector.shape_cast %15 : vector<1x128x128xf32> to vector<128x128xf32>
    %cst_13 = arith.constant dense<0.000000e+00> : vector<192x128xf32>
    %17 = tpu.matmul %14, %16, %cst_13 {dimension_numbers = #tpu.dot_dimension_numbers<[1], [0], [0], [1], [0, 0, 1, 1], [], []>} : vector<192x128xf32>, vector<128x128xf32>, vector<192x128xf32> -> vector<192x128xf32>
    %18 = arith.addf %13, %17 : vector<192x128xf32>
    %c0_14 = arith.constant 0 : index
    %c0_15 = arith.constant 0 : index
    %c1 = arith.constant 1 : index
    %c0_16 = arith.constant 0 : index
    %19 = vector.load %arg2[%c0_14, %c0_15, %c1, %c0_16] : memref<1x1x248x128xf32, #tpu.memory_space<vmem>>, vector<1x1x240x128xf32>
    %20 = vector.shape_cast %19 : vector<1x1x240x128xf32> to vector<240x128xf32>
    %21 = vector.extract_strided_slice %20 {offsets = [0, 0], sizes = [192, 128], strides = [1, 1]} : vector<240x128xf32> to vector<192x128xf32>
    %c1_17 = arith.constant 1 : index
    %c0_18 = arith.constant 0 : index
    %c0_19 = arith.constant 0 : index
    %22 = vector.load %arg3[%c1_17, %c0_18, %c0_19] : memref<9x128x128xf32, #tpu.memory_space<vmem>>, vector<1x128x128xf32>
    %23 = vector.shape_cast %22 : vector<1x128x128xf32> to vector<128x128xf32>
    %cst_20 = arith.constant dense<0.000000e+00> : vector<192x128xf32>
    %24 = tpu.matmul %21, %23, %cst_20 {dimension_numbers = #tpu.dot_dimension_numbers<[1], [0], [0], [1], [0, 0, 1, 1], [], []>} : vector<192x128xf32>, vector<128x128xf32>, vector<192x128xf32> -> vector<192x128xf32>
    %25 = arith.addf %18, %24 : vector<192x128xf32>
    %26 = vector.extract_strided_slice %20 {offsets = [24, 0], sizes = [192, 128], strides = [1, 1]} : vector<240x128xf32> to vector<192x128xf32>
    %c4 = arith.constant 4 : index
    %c0_21 = arith.constant 0 : index
    %c0_22 = arith.constant 0 : index
    %27 = vector.load %arg3[%c4, %c0_21, %c0_22] : memref<9x128x128xf32, #tpu.memory_space<vmem>>, vector<1x128x128xf32>
    %28 = vector.shape_cast %27 : vector<1x128x128xf32> to vector<128x128xf32>
    %cst_23 = arith.constant dense<0.000000e+00> : vector<192x128xf32>
    %29 = tpu.matmul %26, %28, %cst_23 {dimension_numbers = #tpu.dot_dimension_numbers<[1], [0], [0], [1], [0, 0, 1, 1], [], []>} : vector<192x128xf32>, vector<128x128xf32>, vector<192x128xf32> -> vector<192x128xf32>
    %30 = arith.addf %25, %29 : vector<192x128xf32>
    %31 = vector.extract_strided_slice %20 {offsets = [48, 0], sizes = [192, 128], strides = [1, 1]} : vector<240x128xf32> to vector<192x128xf32>
    %c7 = arith.constant 7 : index
    %c0_24 = arith.constant 0 : index
    %c0_25 = arith.constant 0 : index
    %32 = vector.load %arg3[%c7, %c0_24, %c0_25] : memref<9x128x128xf32, #tpu.memory_space<vmem>>, vector<1x128x128xf32>
    %33 = vector.shape_cast %32 : vector<1x128x128xf32> to vector<128x128xf32>
    %cst_26 = arith.constant dense<0.000000e+00> : vector<192x128xf32>
    %34 = tpu.matmul %31, %33, %cst_26 {dimension_numbers = #tpu.dot_dimension_numbers<[1], [0], [0], [1], [0, 0, 1, 1], [], []>} : vector<192x128xf32>, vector<128x128xf32>, vector<192x128xf32> -> vector<192x128xf32>
    %35 = arith.addf %30, %34 : vector<192x128xf32>
    %c0_27 = arith.constant 0 : index
    %c0_28 = arith.constant 0 : index
    %c2 = arith.constant 2 : index
    %c0_29 = arith.constant 0 : index
    %36 = vector.load %arg2[%c0_27, %c0_28, %c2, %c0_29] : memref<1x1x248x128xf32, #tpu.memory_space<vmem>>, vector<1x1x240x128xf32>
    %37 = vector.shape_cast %36 : vector<1x1x240x128xf32> to vector<240x128xf32>
    %38 = vector.extract_strided_slice %37 {offsets = [0, 0], sizes = [192, 128], strides = [1, 1]} : vector<240x128xf32> to vector<192x128xf32>
    %c2_30 = arith.constant 2 : index
    %c0_31 = arith.constant 0 : index
    %c0_32 = arith.constant 0 : index
    %39 = vector.load %arg3[%c2_30, %c0_31, %c0_32] : memref<9x128x128xf32, #tpu.memory_space<vmem>>, vector<1x128x128xf32>
    %40 = vector.shape_cast %39 : vector<1x128x128xf32> to vector<128x128xf32>
    %cst_33 = arith.constant dense<0.000000e+00> : vector<192x128xf32>
    %41 = tpu.matmul %38, %40, %cst_33 {dimension_numbers = #tpu.dot_dimension_numbers<[1], [0], [0], [1], [0, 0, 1, 1], [], []>} : vector<192x128xf32>, vector<128x128xf32>, vector<192x128xf32> -> vector<192x128xf32>
    %42 = arith.addf %35, %41 : vector<192x128xf32>
    %43 = vector.extract_strided_slice %37 {offsets = [24, 0], sizes = [192, 128], strides = [1, 1]} : vector<240x128xf32> to vector<192x128xf32>
    %c5 = arith.constant 5 : index
    %c0_34 = arith.constant 0 : index
    %c0_35 = arith.constant 0 : index
    %44 = vector.load %arg3[%c5, %c0_34, %c0_35] : memref<9x128x128xf32, #tpu.memory_space<vmem>>, vector<1x128x128xf32>
    %45 = vector.shape_cast %44 : vector<1x128x128xf32> to vector<128x128xf32>
    %cst_36 = arith.constant dense<0.000000e+00> : vector<192x128xf32>
    %46 = tpu.matmul %43, %45, %cst_36 {dimension_numbers = #tpu.dot_dimension_numbers<[1], [0], [0], [1], [0, 0, 1, 1], [], []>} : vector<192x128xf32>, vector<128x128xf32>, vector<192x128xf32> -> vector<192x128xf32>
    %47 = arith.addf %42, %46 : vector<192x128xf32>
    %48 = vector.extract_strided_slice %37 {offsets = [48, 0], sizes = [192, 128], strides = [1, 1]} : vector<240x128xf32> to vector<192x128xf32>
    %c8 = arith.constant 8 : index
    %c0_37 = arith.constant 0 : index
    %c0_38 = arith.constant 0 : index
    %49 = vector.load %arg3[%c8, %c0_37, %c0_38] : memref<9x128x128xf32, #tpu.memory_space<vmem>>, vector<1x128x128xf32>
    %50 = vector.shape_cast %49 : vector<1x128x128xf32> to vector<128x128xf32>
    %cst_39 = arith.constant dense<0.000000e+00> : vector<192x128xf32>
    %51 = tpu.matmul %48, %50, %cst_39 {dimension_numbers = #tpu.dot_dimension_numbers<[1], [0], [0], [1], [0, 0, 1, 1], [], []>} : vector<192x128xf32>, vector<128x128xf32>, vector<192x128xf32> -> vector<192x128xf32>
    %52 = arith.addf %47, %51 : vector<192x128xf32>
    %cst_40 = arith.constant 0.000000e+00 : f32
    %53 = vector.broadcast %cst_40 : f32 to vector<192x128xf32>
    %54 = arith.maximumf %52, %53 : vector<192x128xf32>
    %c0_41 = arith.constant 0 : index
    %c0_42 = arith.constant 0 : index
    %c0_43 = arith.constant 0 : index
    %55 = vector.load %arg5[%c0_41, %c0_42, %c0_43] : memref<1x192x128xf32, #tpu.memory_space<vmem>>, vector<1x192x128xf32>
    %56 = vector.shape_cast %55 : vector<1x192x128xf32> to vector<192x128xf32>
    %57 = vector.shape_cast %54 : vector<192x128xf32> to vector<1x192x128xf32>
    tpu.vector_store %arg5[%c0_41, %c0_42, %c0_43], %57 {strides = array<i32>} : memref<1x192x128xf32, #tpu.memory_space<vmem>>, vector<1x192x128xf32>,
    return
  }
  func.func @transform_0(%arg0: i32, %arg1: i32) -> (i32, i32, i32, i32) {
    %c0_i32 = arith.constant 0 : i32
    %c0_i32_0 = arith.constant 0 : i32
    %c0_i32_1 = arith.constant 0 : i32
    return %arg0, %arg1, %c0_i32, %c0_i32_0 : i32, i32, i32, i32
  }
  func.func @transform_1(%arg0: i32, %arg1: i32) -> (i32, i32, i32) {
    %c0_i32 = arith.constant 0 : i32
    %c0_i32_0 = arith.constant 0 : i32
    %c0_i32_1 = arith.constant 0 : i32
    %c0_i32_2 = arith.constant 0 : i32
    return %c0_i32, %c0_i32_0, %c0_i32_1 : i32, i32, i32
  }
  func.func @transform_2(%arg0: i32, %arg1: i32) -> (i32, i32) {
    %c0_i32 = arith.constant 0 : i32
    %c0_i32_0 = arith.constant 0 : i32
    %c0_i32_1 = arith.constant 0 : i32
    return %c0_i32, %c0_i32_0 : i32, i32
  }
  func.func @transform_3(%arg0: i32, %arg1: i32) -> (i32, i32, i32) {
    %c0_i32 = arith.constant 0 : i32
    %c0_i32_0 = arith.constant 0 : i32
    return %arg0, %arg1, %c0_i32 : i32, i32, i32
  }
}

</mosaic_0001>

<bundles_post_ra>
// kernel: conv_bottleneck.1
= control target key start
LH: loop header
LB: loop body
LE: loop exit
PB: predicated region body
PF: predicated region fallthrough
CT: control target
= control target key end

     0   :  { %s1877_s12 = smov 0   ;;  %s1879_s13 = smov 0   ;;  %s2954_s0 = inlined_call_operand.vmem [shape: f32[2,2,248,128], index: 0, kind: input, shape index: {}]   ;;  %s2955_s1 = inlined_call_operand.vmem [shape: f32[9,128,128], index: 1, kind: input, shape index: {}]   ;;  %s2956_s2 = inlined_call_operand.vmem [shape: f32[1,128], index: 2, kind: input, shape index: {}]   ;;  %s2957_s3 = inlined_call_operand.vmem [shape: f32[2,384,128], index: 3, kind: output, shape index: {}]  }
   0x1   :  { %s1881_s14 = smov 0   ;;  %s1883_s15 = smov 0  }
   0x2   :  { %s1885_s16 = smov 0  }
   0x3 LB: > { %s22_s17 = sadd.s32 1, %s1847_s14  ;;  %s25_s18 = sadd.s32 1, %s1851_s15  ;;  %s1855_s16 = sphi %s1885_s16, %s13_s16   ;;  %s1851_s15 = sphi %s1883_s15, %s2961_s15   ;;  %s1847_s14 = sphi %s1881_s14, %s2960_s14   ;;  %s1843_s13 = sphi %s1879_s13, %s2959_s13   ;;  %s1839_s12 = sphi %s1877_s12, %s2958_s12  }
   0x4   : > { %p23_p0 = scmp.ge.s32.totalorder %s22_s17, 2  ;;  %p1592_p1 = scmp.ge.s32.totalorder %s1855_s16, 1 }
   0x5   : > { %p157_p2 = scmp.lt.s32.totalorder %s1855_s16, 5 }
   0x6   : > { %s2963_s17 = smov (%p23_p0, %s22_s17), 0  ;;  %s2965_s18 = smov (!%p23_p0, %s25_s18), %s1851_s15 }
   0x7   : > { %p158_p3 = pnand %p1592_p1, %p157_p2  ;;  %p27_p4 = scmp.ge.s32.totalorder %s2965_s18, 2 }
   0x8   : > { %p189_p5 = scmp.lt.s32.totalorder (!%p158_p3), %s1843_s13, 1  ;;  %p191_p6 = scmp.lt.s32.totalorder (!%p158_p3), %s1839_s12, 1 }
   0x9   : > { %s2967_s18 = smov (%p27_p4, %s2965_s18), 0  ;;  %161 = sbr.rel (%p158_p3) target bundleno = 611 (0x263), region = 32 }
   0xa   : > { %s198_s30 = smul.u32 (!%p158_p3), 24, %s1839_s12 }
   0xc   : > { %p201_p7 = scmp.lt.s32.totalorder (!%p158_p3), %s198_s30, 47 }
   0xe   : > { %v253_v0 = vld [vmem:[%s2955_s1 + $0x78] sm:$0xff]  ;;  %v252_v1 = vld [vmem:[%s2955_s1 + $0x70] sm:$0xff]  ;;  %v251_v2 = vld [vmem:[%s2955_s1 + $0x68] sm:$0xff]  ;;  %s2969_s13 = smov (!%p189_p5, %s1843_s13), 1  ;;  %s2971_s30 = smov (!%p201_p7, %s198_s30), 47 }
   0xf   : > { %1725 = vmatpush.msra.mxu1 %v253_v0  ;;  %1726 = vmatpush.msra.mxu2 %v253_v0  ;;  %v250_v3 = vld [vmem:[%s2955_s1 + $0x60] sm:$0xff]  ;;  %v249_v4 = vld [vmem:[%s2955_s1 + $0x58] sm:$0xff]  ;;  %v248_v5 = vld [vmem:[%s2955_s1 + $0x50] sm:$0xff]  ;;  %s192_s8 = scalar_select %p191_p6, %s1839_s12, 1 }
  0x10   : > { %1727 = vmatpush.msra.mxu3 %v253_v0  ;;  %258 = vmatpush.msra.mxu0 %v253_v0  ;;  %v247_v6 = vld [vmem:[%s2955_s1 + $0x48] sm:$0xff]  ;;  %v246_v7 = vld [vmem:[%s2955_s1 + $0x40] sm:$0xff]  ;;  %v245_v8 = vld [vmem:[%s2955_s1 + $0x38] sm:$0xff]  ;;  %s1774_s11 = smul.u32 62, %s2969_s13 }
  0x11   : > { %1728 = vmatpush.msra.mxu1 %v252_v1  ;;  %1729 = vmatpush.msra.mxu2 %v252_v1  ;;  %v244_v9 = vld [vmem:[%s2955_s1 + $0x30] sm:$0xff]  ;;  %s1773_s21 = smul.u32 31, %s192_s8  ;;  %v243_v10 = vld [vmem:[%s2955_s1 + $0x28] sm:$0xff]  ;;  %v242_v11 = vld [vmem:[%s2955_s1 + $0x20] sm:$0xff] }
  0x12   : > { %1730 = vmatpush.msra.mxu3 %v252_v1  ;;  %259 = vmatpush.msra.mxu0 %v252_v1  ;;  %v241_v12 = vld [vmem:[%s2955_s1 + $0x18] sm:$0xff]  ;;  %v240_v13 = vld [vmem:[%s2955_s1 + $0x10] sm:$0xff]  ;;  %v239_v14 = vld [vmem:[%s2955_s1 + $0x8] sm:$0xff]  ;;  %s1775_s12 = smul.u32 48, %s2969_s13 }
  0x13   : > { %1731 = vmatpush.msra.mxu1 %v251_v2  ;;  %1732 = vmatpush.msra.mxu2 %v251_v2  ;;  %s195_s26 = sadd.s32 %s1774_s11, %s1773_s21  ;;  %v238_v15 = vld [vmem:[%s2955_s1] sm:$0xff]  ;;  %v1626_v18 = vld [vmem:[%s2955_s1 + $0x378] sm:$0xff]  ;;  %v1625_v22 = vld [vmem:[%s2955_s1 + $0x370] sm:$0xff] }
  0x14   : > { %1733 = vmatpush.msra.mxu3 %v251_v2  ;;  %260 = vmatpush.msra.mxu0 %v251_v2  ;;  %s1593_s29 = sshll.u32 %s195_s26, 3  ;;  %v1610_v20 = vld [vmem:[%s2955_s1 + $0x1f8] sm:$0xff]  ;;  %v1609_v23 = vld [vmem:[%s2955_s1 + $0x1f0] sm:$0xff]  ;;  %v1624_v25 = vld [vmem:[%s2955_s1 + $0x368] sm:$0xff]  ;;  %s204_s4 = sadd.s32 %s1775_s12, %s2971_s30 }
  0x15   : > { %1734 = vmatpush.msra.mxu1 %v250_v3  ;;  %1735 = vmatpush.msra.mxu2 %v250_v3  ;;  %s1966_s9 = scalar_lea.vmem %s2954_s0, %s1593_s29  ;;  %v1642_v21 = vld [vmem:[%s2955_s1 + $0xf8] sm:$0xff]  ;;  %v1641_v24 = vld [vmem:[%s2955_s1 + $0xf0] sm:$0xff]  ;;  %v1608_v27 = vld [vmem:[%s2955_s1 + $0x1e8] sm:$0xff]  ;;  %s1594_s13 = sshll.u32 %s204_s4, 3 }
  0x16   : > { %1736 = vmatpush.msra.mxu3 %v250_v3  ;;  %261 = vmatpush.msra.mxu0 %v250_v3  ;;  %v1972_v16 = vld [vmem:[%s1966_s9 + $0x30] sm:$0xff]  ;;  %v1975_v17 = vld [vmem:[%s1966_s9 + $0x60] sm:$0xff]  ;;  %v1640_v28 = vld [vmem:[%s2955_s1 + $0xe8] sm:$0xff]  ;;  %s2864_s7 = scalar_lea.vmem %s2957_s3, %s1594_s13 }
  0x17   : > { %1737 = vmatpush.msra.mxu1 %v249_v4  ;;  %1738 = vmatpush.msra.mxu2 %v249_v4  ;;  %v1981_v19 = vld [vmem:[%s1966_s9 + $0x90] sm:$0xff]  ;;  %v208_v26 = vld [vmem:[%s1966_s9] sm:$0xff]  ;;  %v2015_v30 = vld [vmem:[%s1966_s9 + $0x38] sm:$0xff] }
  0x18   : > { %1739 = vmatpush.msra.mxu3 %v249_v4  ;;  %262 = vmatpush.msra.mxu0 %v249_v4  ;;  %v1623_v29 = vld [vmem:[%s2955_s1 + $0x360] sm:$0xff]  ;;  %v2018_v31 = vld [vmem:[%s1966_s9 + $0x68] sm:$0xff]  ;;  %v1658_v32 = vld [vmem:[%s2955_s1 + $0x278] sm:$0xff] }
  0x19   : > { %1740 = vmatpush.msra.mxu1 %v248_v5  ;;  %1741 = vmatpush.msra.mxu2 %v248_v5  ;;  %v1639_v33 = vld [vmem:[%s2955_s1 + $0xe0] sm:$0xff]  ;;  %v2027_v34 = vld [vmem:[%s1966_s9 + $0x98] sm:$0xff]  ;;  %v1657_v37 = vld [vmem:[%s2955_s1 + $0x270] sm:$0xff] }
  0x1a   : > { %1742 = vmatpush.msra.mxu3 %v248_v5  ;;  %263 = vmatpush.msra.mxu0 %v248_v5  ;;  %v1622_v35 = vld [vmem:[%s2955_s1 + $0x358] sm:$0xff]  ;;  %v1607_v36 = vld [vmem:[%s2955_s1 + $0x1e0] sm:$0xff]  ;;  %v1621_v39 = vld [vmem:[%s2955_s1 + $0x350] sm:$0xff] }
  0x1b   : > { %1743 = vmatpush.msra.mxu1 %v247_v6  ;;  %1744 = vmatpush.msra.mxu2 %v247_v6  ;;  %v1638_v38 = vld [vmem:[%s2955_s1 + $0xd8] sm:$0xff]  ;;  %v1656_v41 = vld [vmem:[%s2955_s1 + $0x268] sm:$0xff]  ;;  %v1637_v42 = vld [vmem:[%s2955_s1 + $0xd0] sm:$0xff] }
  0x1c   : > { %1745 = vmatpush.msra.mxu3 %v247_v6  ;;  %264 = vmatpush.msra.mxu0 %v247_v6  ;;  %v1606_v40 = vld [vmem:[%s2955_s1 + $0x1d8] sm:$0xff]  ;;  %v209_v43 = vld [vmem:[%s1966_s9 + $0x8] sm:$0xff]  ;;  %v1605_v45 = vld [vmem:[%s2955_s1 + $0x1d0] sm:$0xff] }
  0x1d   : > { %1746 = vmatpush.msra.mxu1 %v246_v7  ;;  %1747 = vmatpush.msra.mxu2 %v246_v7  ;;  %v1620_v44 = vld [vmem:[%s2955_s1 + $0x348] sm:$0xff]  ;;  %v2064_v46 = vld [vmem:[%s1966_s9 + $0x40] sm:$0xff]  ;;  %v2067_v47 = vld [vmem:[%s1966_s9 + $0x70] sm:$0xff] }
  0x1e   : > { %1748 = vmatpush.msra.mxu3 %v246_v7  ;;  %265 = vmatpush.msra.mxu0 %v246_v7  ;;  %v1655_v48 = vld [vmem:[%s2955_s1 + $0x260] sm:$0xff]  ;;  %v1636_v49 = vld [vmem:[%s2955_s1 + $0xc8] sm:$0xff]  ;;  %v1654_v53 = vld [vmem:[%s2955_s1 + $0x258] sm:$0xff] }
  0x1f   : > { %1749 = vmatpush.msra.mxu1 %v245_v8  ;;  %1750 = vmatpush.msra.mxu2 %v245_v8  ;;  %v2076_v50 = vld [vmem:[%s1966_s9 + $0xa0] sm:$0xff]  ;;  %v1604_v52 = vld [vmem:[%s2955_s1 + $0x1c8] sm:$0xff]  ;;  %v1618_v55 = vld [vmem:[%s2955_s1 + $0x338] sm:$0xff] }
  0x20   : > { %1751 = vmatpush.msra.mxu3 %v245_v8  ;;  %266 = vmatpush.msra.mxu0 %v245_v8  ;;  %v1619_v51 = vld [vmem:[%s2955_s1 + $0x340] sm:$0xff]  ;;  %v1653_v57 = vld [vmem:[%s2955_s1 + $0x250] sm:$0xff]  ;;  %v1634_v59 = vld [vmem:[%s2955_s1 + $0xb8] sm:$0xff] }
  0x21   : > { %1752 = vmatpush.msra.mxu1 %v244_v9  ;;  %1753 = vmatpush.msra.mxu2 %v244_v9  ;;  %v1635_v54 = vld [vmem:[%s2955_s1 + $0xc0] sm:$0xff]  ;;  %v210_v58 = vld [vmem:[%s1966_s9 + $0x10] sm:$0xff]  ;;  %v1602_v61 = vld [vmem:[%s2955_s1 + $0x1b8] sm:$0xff] }
  0x22   : > { %1754 = vmatpush.msra.mxu3 %v244_v9  ;;  %267 = vmatpush.msra.mxu0 %v244_v9  ;;  %v1603_v56 = vld [vmem:[%s2955_s1 + $0x1c0] sm:$0xff]  ;;  %v1617_v60 = vld [vmem:[%s2955_s1 + $0x330] sm:$0xff]  ;;  %v2113_v62 = vld [vmem:[%s1966_s9 + $0x48] sm:$0xff] }
  0x23   : > { %1755 = vmatpush.msra.mxu1 %v243_v10  ;;  %1756 = vmatpush.msra.mxu2 %v243_v10  ;;  %v2116_v63 = vld [vmem:[%s1966_s9 + $0x78] sm:$0xff]  ;;  %v1652_v0 = vld [vmem:[%s2955_s1 + $0x248] sm:$0xff]  ;;  %v1633_v1 = vld [vmem:[%s2955_s1 + $0xb0] sm:$0xff] }
  0x24   : > { %1757 = vmatpush.msra.mxu3 %v243_v10  ;;  %268 = vmatpush.msra.mxu0 %v243_v10  ;;  %v2125_v2 = vld [vmem:[%s1966_s9 + $0xa8] sm:$0xff]  ;;  %v1601_v4 = vld [vmem:[%s2955_s1 + $0x1b0] sm:$0xff]  ;;  %v1651_v5 = vld [vmem:[%s2955_s1 + $0x240] sm:$0xff] }
  0x25   : > { %1758 = vmatpush.msra.mxu1 %v242_v11  ;;  %1759 = vmatpush.msra.mxu2 %v242_v11  ;;  %v1616_v3 = vld [vmem:[%s2955_s1 + $0x328] sm:$0xff]  ;;  %v1615_v7 = vld [vmem:[%s2955_s1 + $0x320] sm:$0xff]  ;;  %v1650_v9 = vld [vmem:[%s2955_s1 + $0x238] sm:$0xff] }
  0x26   : > { %1760 = vmatpush.msra.mxu3 %v242_v11  ;;  %269 = vmatpush.msra.mxu0 %v242_v11  ;;  %v1632_v6 = vld [vmem:[%s2955_s1 + $0xa8] sm:$0xff]  ;;  %v2152_v10 = vld [vmem:[%s1966_s9 + $0x18] sm:$0xff]  ;;  %v1631_v11 = vld [vmem:[%s2955_s1 + $0xa0] sm:$0xff] }
  0x27   : > { %1761 = vmatpush.msra.mxu1 %v241_v12  ;;  %1762 = vmatpush.msra.mxu2 %v241_v12  ;;  %v1600_v8 = vld [vmem:[%s2955_s1 + $0x1a8] sm:$0xff] }
  0x28   : > { %1763 = vmatpush.msra.mxu3 %v241_v12  ;;  %270 = vmatpush.msra.mxu0 %v241_v12  ;;  %v1614_v12 = vld [vmem:[%s2955_s1 + $0x318] sm:$0xff] }
  0x29   : > { %1764 = vmatpush.msra.mxu1 %v240_v13  ;;  %1765 = vmatpush.msra.mxu2 %v240_v13 }
  0x2a   : > { %1766 = vmatpush.msra.mxu3 %v240_v13  ;;  %271 = vmatpush.msra.mxu0 %v240_v13  ;;  %v1599_v13 = vld [vmem:[%s2955_s1 + $0x1a0] sm:$0xff] }
  0x2b   : > { %1767 = vmatpush.msra.mxu1 %v239_v14  ;;  %1768 = vmatpush.msra.mxu2 %v239_v14 }
  0x2c   : > { %1769 = vmatpush.msra.mxu3 %v239_v14  ;;  %272 = vmatpush.msra.mxu0 %v239_v14  ;;  %v2164_v14 = vld [vmem:[%s1966_s9 + $0x50] sm:$0xff] }
  0x2d   : > { %1770 = vmatpush.msra.mxu1 %v238_v15  ;;  %1771 = vmatpush.msra.mxu2 %v238_v15 }
  0x2e   : > { %292 = vmatmul.f32.vlgmr.msra.gmra.mxu1 %v1972_v16  ;;  %310 = vmatmul.f32.vlgmr.msra.gmra.mxu2 %v1975_v17 }
  0x2f   : > { %494 = vmatpush.msrb.mxu2 %v1626_v18  ;;  %1772 = vmatpush.msra.mxu3 %v238_v15  ;;  %v1649_v18 = vld [vmem:[%s2955_s1 + $0x230] sm:$0xff] }
  0x30   : > { %328 = vmatmul.f32.vlgmr.msra.gmra.mxu3 %v1981_v19  ;;  %364 = vmatpush.msrb.mxu1 %v1610_v20  ;;  %v1630_v20 = vld [vmem:[%s2955_s1 + $0x98] sm:$0xff] }
  0x31   : > { %654 = vmatpush.msrb.mxu3 %v1642_v21  ;;  %495 = vmatpush.msrb.mxu2 %v1625_v22  ;;  %v2177_v21 = vld [vmem:[%s1966_s9 + $0xb0] sm:$0xff] }
  0x32   : > { %365 = vmatpush.msrb.mxu1 %v1609_v23  ;;  %273 = vmatpush.msra.mxu0 %v238_v15  ;;  %v2167_v15 = vld [vmem:[%s1966_s9 + $0x80] sm:$0xff]  ;;  %v1613_v22 = vld [vmem:[%s2955_s1 + $0x310] sm:$0xff]  ;;  %v1598_v23 = vld [vmem:[%s2955_s1 + $0x198] sm:$0xff] }
  0x33   : > { %655 = vmatpush.msrb.mxu3 %v1641_v24  ;;  %496 = vmatpush.msrb.mxu2 %v1624_v25  ;;  %v1648_v24 = vld [vmem:[%s2955_s1 + $0x228] sm:$0xff]  ;;  %v1629_v25 = vld [vmem:[%s2955_s1 + $0x90] sm:$0xff] }
  0x34   : > { %274 = vmatmul.f32.vlgmr.msra.gmra.mxu0 %v208_v26  ;;  %366 = vmatpush.msrb.mxu1 %v1608_v27  ;;  %v1612_v26 = vld [vmem:[%s2955_s1 + $0x308] sm:$0xff]  ;;  %v1597_v27 = vld [vmem:[%s2955_s1 + $0x190] sm:$0xff] }
  0x35   : > { %656 = vmatpush.msrb.mxu3 %v1640_v28  ;;  %497 = vmatpush.msrb.mxu2 %v1623_v29  ;;  %v1647_v28 = vld [vmem:[%s2955_s1 + $0x220] sm:$0xff] }
  0x36   : > { %295 = vmatmul.f32.gmra.mxu1 %v2015_v30  ;;  %313 = vmatmul.f32.gmra.mxu2 %v2018_v31  ;;  %v2204_v29 = vld [vmem:[%s1966_s9 + $0x20] sm:$0xff] }
  0x37   : > { %784 = vmatpush.msrb.mxu0 %v1658_v32  ;;  %657 = vmatpush.msrb.mxu3 %v1639_v33  ;;  %v1628_v32 = vld [vmem:[%s2955_s1 + $0x88] sm:$0xff] }
  0x38   : > { %331 = vmatmul.f32.gmra.mxu3 %v2027_v34  ;;  %498 = vmatpush.msrb.mxu2 %v1622_v35  ;;  %v1596_v33 = vld [vmem:[%s2955_s1 + $0x188] sm:$0xff]  ;;  %v1611_v35 = vld [vmem:[%s2955_s1 + $0x300] sm:$0xff] }
  0x39   : > { %367 = vmatpush.msrb.mxu1 %v1607_v36  ;;  %785 = vmatpush.msrb.mxu0 %v1657_v37  ;;  %v2216_v36 = vld [vmem:[%s1966_s9 + $0x58] sm:$0xff]  ;;  %v2219_v37 = vld [vmem:[%s1966_s9 + $0x88] sm:$0xff] }
  0x3a   : > { %658 = vmatpush.msrb.mxu3 %v1638_v38  ;;  %499 = vmatpush.msrb.mxu2 %v1621_v39  ;;  %v1646_v38 = vld [vmem:[%s2955_s1 + $0x218] sm:$0xff]  ;;  %v1595_v39 = vld [vmem:[%s2955_s1 + $0x180] sm:$0xff] }
  0x3b   : > { %368 = vmatpush.msrb.mxu1 %v1606_v40  ;;  %786 = vmatpush.msrb.mxu0 %v1656_v41  ;;  %v2229_v40 = vld [vmem:[%s1966_s9 + $0xb8] sm:$0xff] }
  0x3c   : > { %659 = vmatpush.msrb.mxu3 %v1637_v42  ;;  %277 = vmatmul.f32.gmra.mxu0 %v209_v43  ;;  %v1690_v41 = vld [vmem:[%s2955_s1 + $0x178] sm:$0xff]  ;;  %v1627_v42 = vld [vmem:[%s2955_s1 + $0x80] sm:$0xff]  ;;  %v1645_v43 = vld [vmem:[%s2955_s1 + $0x210] sm:$0xff] }
  0x3d   : > { %500 = vmatpush.msrb.mxu2 %v1620_v44  ;;  %369 = vmatpush.msrb.mxu1 %v1605_v45  ;;  %v1706_v44 = vld [vmem:[%s2955_s1 + $0x2f8] sm:$0xff] }
  0x3e   : > { %298 = vmatmul.f32.gmra.mxu1 %v2064_v46  ;;  %316 = vmatmul.f32.gmra.mxu2 %v2067_v47  ;;  %v1674_v45 = vld [vmem:[%s2955_s1 + $0x3f8] sm:$0xff] }
  0x3f   : > { %787 = vmatpush.msrb.mxu0 %v1655_v48  ;;  %660 = vmatpush.msrb.mxu3 %v1636_v49  ;;  %v1644_v48 = vld [vmem:[%s2955_s1 + $0x208] sm:$0xff]  ;;  %v1689_v49 = vld [vmem:[%s2955_s1 + $0x170] sm:$0xff] }
  0x40   : > { %334 = vmatmul.f32.gmra.mxu3 %v2076_v50  ;;  %501 = vmatpush.msrb.mxu2 %v1619_v51  ;;  %v213_v51 = vld [vmem:[%s1966_s9 + $0x28] sm:$0xff] }
  0x41   : > { %370 = vmatpush.msrb.mxu1 %v1604_v52  ;;  %788 = vmatpush.msrb.mxu0 %v1654_v53  ;;  %v1705_v52 = vld [vmem:[%s2955_s1 + $0x2f0] sm:$0xff]  ;;  %v1643_v53 = vld [vmem:[%s2955_s1 + $0x200] sm:$0xff] }
  0x42   : > { %661 = vmatpush.msrb.mxu3 %v1635_v54  ;;  %502 = vmatpush.msrb.mxu2 %v1618_v55  ;;  %v1673_v54 = vld [vmem:[%s2955_s1 + $0x3f0] sm:$0xff]  ;;  %v1722_v55 = vld [vmem:[%s2955_s1 + $0x478] sm:$0xff] }
  0x43   : > { %371 = vmatpush.msrb.mxu1 %v1603_v56  ;;  %789 = vmatpush.msrb.mxu0 %v1653_v57  ;;  %v1688_v56 = vld [vmem:[%s2955_s1 + $0x168] sm:$0xff] }
  0x44   : > { %280 = vmatmul.f32.gmra.mxu0 %v210_v58  ;;  %662 = vmatpush.msrb.mxu3 %v1634_v59  ;;  %v607_v57 = vld [vmem:[%s1966_s9 + $0x1] sm:$0xff]  ;;  %v1721_v59 = vld [vmem:[%s2955_s1 + $0x470] sm:$0xff] }
  0x45   : > { %503 = vmatpush.msrb.mxu2 %v1617_v60  ;;  %372 = vmatpush.msrb.mxu1 %v1602_v61  ;;  %v1672_v58 = vld [vmem:[%s2955_s1 + $0x3e8] sm:$0xff] }
  0x46   : > { %301 = vmatmul.f32.gmra.mxu1 %v2113_v62  ;;  %319 = vmatmul.f32.gmra.mxu2 %v2116_v63  ;;  %v1704_v60 = vld [vmem:[%s2955_s1 + $0x2e8] sm:$0xff] }
  0x47   : > { %790 = vmatpush.msrb.mxu0 %v1652_v0  ;;  %663 = vmatpush.msrb.mxu3 %v1633_v1  ;;  %v1720_v61 = vld [vmem:[%s2955_s1 + $0x468] sm:$0xff]  ;;  %v1687_v0 = vld [vmem:[%s2955_s1 + $0x160] sm:$0xff] }
  0x48   : > { %337 = vmatmul.f32.gmra.mxu3 %v2125_v2  ;;  %504 = vmatpush.msrb.mxu2 %v1616_v3  ;;  %v1703_v1 = vld [vmem:[%s2955_s1 + $0x2e0] sm:$0xff] }
  0x49   : > { %373 = vmatpush.msrb.mxu1 %v1601_v4  ;;  %791 = vmatpush.msrb.mxu0 %v1651_v5  ;;  %v610_v3 = vld [vmem:[%s1966_s9 + $0x19] sm:$0xff]  ;;  %v608_v4 = vld [vmem:[%s1966_s9 + $0x9] sm:$0xff] }
  0x4a   : > { %664 = vmatpush.msrb.mxu3 %v1632_v6  ;;  %505 = vmatpush.msrb.mxu2 %v1615_v7  ;;  %v1671_v5 = vld [vmem:[%s2955_s1 + $0x3e0] sm:$0xff] }
  0x4b   : > { %374 = vmatpush.msrb.mxu1 %v1600_v8  ;;  %792 = vmatpush.msrb.mxu0 %v1650_v9  ;;  %v1719_v6 = vld [vmem:[%s2955_s1 + $0x460] sm:$0xff]  ;;  %v609_v8 = vld [vmem:[%s1966_s9 + $0x11] sm:$0xff] }
  0x4c   : > { %283 = vmatmul.f32.gmra.mxu0 %v2152_v10  ;;  %665 = vmatpush.msrb.mxu3 %v1631_v11  ;;  %v611_v7 = vld [vmem:[%s1966_s9 + $0x21] sm:$0xff]  ;;  %v1686_v9 = vld [vmem:[%s2955_s1 + $0x158] sm:$0xff] }
  0x4d   : > { %506 = vmatpush.msrb.mxu2 %v1614_v12  ;;  %375 = vmatpush.msrb.mxu1 %v1599_v13  ;;  %v1670_v11 = vld [vmem:[%s2955_s1 + $0x3d8] sm:$0xff]  ;;  %v612_v12 = vld [vmem:[%s1966_s9 + $0x29] sm:$0xff] }
  0x4e   : > { %304 = vmatmul.f32.gmra.mxu1 %v2164_v14  ;;  %322 = vmatmul.f32.gmra.mxu2 %v2167_v15  ;;  %v1718_v13 = vld [vmem:[%s2955_s1 + $0x458] sm:$0xff] }
  0x4f   : > { %793 = vmatpush.msrb.mxu0 %v1649_v18  ;;  %666 = vmatpush.msrb.mxu3 %v1630_v20  ;;  %v1685_v18 = vld [vmem:[%s2955_s1 + $0x150] sm:$0xff] }
  0x50   : > { %340 = vmatmul.f32.gmra.mxu3 %v2177_v21  ;;  %507 = vmatpush.msrb.mxu2 %v1613_v22  ;;  %v1701_v20 = vld [vmem:[%s2955_s1 + $0x2d0] sm:$0xff] }
  0x51   : > { %376 = vmatpush.msrb.mxu1 %v1598_v23  ;;  %794 = vmatpush.msrb.mxu0 %v1648_v24  ;;  %v2327_v22 = vld [vmem:[%s1966_s9 + $0x31] sm:$0xff]  ;;  %v2339_v24 = vld [vmem:[%s1966_s9 + $0x39] sm:$0xff] }
  0x52   : > { %667 = vmatpush.msrb.mxu3 %v1629_v25  ;;  %508 = vmatpush.msrb.mxu2 %v1612_v26  ;;  %v1717_v23 = vld [vmem:[%s2955_s1 + $0x450] sm:$0xff]  ;;  %v1700_v25 = vld [vmem:[%s2955_s1 + $0x2c8] sm:$0xff] }
  0x53   : > { %377 = vmatpush.msrb.mxu1 %v1597_v27  ;;  %795 = vmatpush.msrb.mxu0 %v1647_v28  ;;  %v1668_v26 = vld [vmem:[%s2955_s1 + $0x3c8] sm:$0xff] }
  0x54   : > { %286 = vmatmul.f32.gmra.mxu0 %v2204_v29  ;;  %668 = vmatpush.msrb.mxu3 %v1628_v32  ;;  %v2354_v27 = vld [vmem:[%s1966_s9 + $0x41] sm:$0xff]  ;;  %v2364_v28 = vld [vmem:[%s1966_s9 + $0x49] sm:$0xff] }
  0x55   : > { %378 = vmatpush.msrb.mxu1 %v1596_v33  ;;  %509 = vmatpush.msrb.mxu2 %v1611_v35  ;;  %v1667_v32 = vld [vmem:[%s2955_s1 + $0x3c0] sm:$0xff]  ;;  %v2380_v33 = vld [vmem:[%s1966_s9 + $0x51] sm:$0xff] }
  0x56   : > { %307 = vmatmul.f32.gmra.mxu1 %v2216_v36  ;;  %325 = vmatmul.f32.gmra.mxu2 %v2219_v37  ;;  %v1715_v35 = vld [vmem:[%s2955_s1 + $0x440] sm:$0xff] }
  0x57   : > { %796 = vmatpush.msrb.mxu0 %v1646_v38  ;;  %379 = vmatpush.msrb.mxu1 %v1595_v39  ;;  %v1698_v38 = vld [vmem:[%s2955_s1 + $0x2b8] sm:$0xff] }
  0x58   : > { %343 = vmatmul.f32.gmra.mxu3 %v2229_v40  ;;  %1074 = vmatpush.msra.mxu2 %v1690_v41  ;;  %v2396_v39 = vld [vmem:[%s1966_s9 + $0x59] sm:$0xff] }
  0x59   : > { %669 = vmatpush.msrb.mxu3 %v1627_v42  ;;  %797 = vmatpush.msrb.mxu0 %v1645_v43  ;;  %v1714_v41 = vld [vmem:[%s2955_s1 + $0x438] sm:$0xff]  ;;  %v2409_v42 = vld [vmem:[%s1966_s9 + $0x61] sm:$0xff]  ;;  %v1681_v43 = vld [vmem:[%s2955_s1 + $0x130] sm:$0xff] }
  0x5a   : > { %914 = vmatpush.msra.mxu1 %v1674_v45  ;;  %1075 = vmatpush.msra.mxu2 %v1689_v49  ;;  %v1665_v45 = vld [vmem:[%s2955_s1 + $0x3b0] sm:$0xff] }
  0x5b   : > { %1204 = vmatpush.msra.mxu3 %v1706_v44  ;;  %798 = vmatpush.msrb.mxu0 %v1644_v48  ;;  %v2428_v48 = vld [vmem:[%s2956_s2] ss:$0 sm:$0xff] }
  0x5c   : > { %289 = vmatmul.f32.gmra.mxu0 %v213_v51  ;;  %915 = vmatpush.msra.mxu1 %v1673_v54 }
  0x5d   : > { %1205 = vmatpush.msra.mxu3 %v1705_v52  ;;  %799 = vmatpush.msrb.mxu0 %v1643_v53  ;;  %v2434_v52 = vld [vmem:[%s1966_s9 + $0x69] sm:$0xff] }
  0x5e   : > { %380 = vmatmul.f32.vlgmr.msrb.gmra.mxu1 %v2152_v10  ;;  %510 = vmatmul.f32.vlgmr.msrb.gmra.mxu2 %v1972_v16  ;;  %v1702_v10 = vld [vmem:[%s2955_s1 + $0x2d8] sm:$0xff] }
  0x5f   : > { %1334 = vmatpush.msra.mxu0 %v1722_v55  ;;  %1076 = vmatpush.msra.mxu2 %v1688_v56  ;;  %v1713_v56 = vld [vmem:[%s2955_s1 + $0x430] sm:$0xff] }
  0x60   : > { %670 = vmatmul.f32.vlgmr.msrb.gmra.mxu3 %v607_v57  ;;  %916 = vmatpush.msra.mxu1 %v1672_v58  ;;  %v1680_v57 = vld [vmem:[%s2955_s1 + $0x128] sm:$0xff] }
  0x61   : > { %1335 = vmatpush.msra.mxu0 %v1721_v59  ;;  %1206 = vmatpush.msra.mxu3 %v1704_v60  ;;  %v1696_v58 = vld [vmem:[%s2955_s1 + $0x2a8] sm:$0xff] }
  0x62   : > { %1077 = vmatpush.msra.mxu2 %v1687_v0  ;;  %917 = vmatpush.msra.mxu1 %v1671_v5  ;;  %v1664_v0 = vld [vmem:[%s2955_s1 + $0x3a8] sm:$0xff] }
  0x63   : > { %1336 = vmatpush.msra.mxu0 %v1720_v61  ;;  %1207 = vmatpush.msra.mxu3 %v1703_v1  ;;  %v2460_v61 = vld [vmem:[%s1966_s9 + $0x71] sm:$0xff]  ;;  %v1712_v5 = vld [vmem:[%s2955_s1 + $0x428] sm:$0xff] }
  0x64   : > { %800 = vmatmul.f32.vlgmr.msrb.gmra.mxu0 %v610_v3  ;;  %1078 = vmatpush.msra.mxu2 %v1686_v9 }
  0x65   : > { %1337 = vmatpush.msra.mxu0 %v1719_v6  ;;  %1208 = vmatpush.msra.mxu3 %v1702_v10 }
  0x66   : > { %383 = vmatmul.f32.gmra.mxu1 %v2204_v29  ;;  %513 = vmatmul.f32.gmra.mxu2 %v2015_v30  ;;  %v1683_v29 = vld [vmem:[%s2955_s1 + $0x140] sm:$0xff] }
  0x67   : > { %918 = vmatpush.msra.mxu1 %v1670_v11  ;;  %1338 = vmatpush.msra.mxu0 %v1718_v13  ;;  %v1695_v13 = vld [vmem:[%s2955_s1 + $0x2a0] sm:$0xff] }
  0x68   : > { %673 = vmatmul.f32.gmra.mxu3 %v608_v4  ;;  %1079 = vmatpush.msra.mxu2 %v1685_v18  ;;  %v1663_v18 = vld [vmem:[%s2955_s1 + $0x3a0] sm:$0xff] }
  0x69   : > { %1209 = vmatpush.msra.mxu3 %v1701_v20  ;;  %1339 = vmatpush.msra.mxu0 %v1717_v23  ;;  %v2509_v23 = vld [vmem:[%s1966_s9 + $0x81] sm:$0xff] }
  0x6b   : > { %1210 = vmatpush.msra.mxu3 %v1700_v25 }
  0x6c   : > { %803 = vmatmul.f32.gmra.mxu0 %v611_v7 }
  0x6e   : > { %386 = vmatmul.f32.gmra.mxu1 %v213_v51  ;;  %516 = vmatmul.f32.gmra.mxu2 %v2064_v46 }
  0x70   : > { %676 = vmatmul.f32.gmra.mxu3 %v609_v8  ;;  %v2483_v8 = vld [vmem:[%s1966_s9 + $0x79] sm:$0xff] }
  0x74   : > { %806 = vmatmul.f32.gmra.mxu0 %v612_v12 }
  0x76   : > { %389 = vmatmul.f32.gmra.mxu1 %v1972_v16  ;;  %519 = vmatmul.f32.gmra.mxu2 %v2113_v62  ;;  %v1669_v16 = vld [vmem:[%s2955_s1 + $0x3d0] sm:$0xff] }
  0x77   : > { %919 = vmatpush.msra.mxu1 %v1669_v16 }
  0x78   : > { %679 = vmatmul.f32.gmra.mxu3 %v610_v3 }
  0x79   : > { %920 = vmatpush.msra.mxu1 %v1668_v26 }
  0x7b   : > { %921 = vmatpush.msra.mxu1 %v1667_v32 }
  0x7c   : > { %809 = vmatmul.f32.gmra.mxu0 %v2327_v22 }
  0x7e   : > { %392 = vmatmul.f32.gmra.mxu1 %v2015_v30  ;;  %522 = vmatmul.f32.gmra.mxu2 %v2164_v14  ;;  %v1684_v30 = vld [vmem:[%s2955_s1 + $0x148] sm:$0xff] }
  0x7f   : > { %1080 = vmatpush.msra.mxu2 %v1684_v30 }
  0x80   : > { %682 = vmatmul.f32.gmra.mxu3 %v611_v7 }
  0x81   : > { %1081 = vmatpush.msra.mxu2 %v1683_v29  ;;  %v1678_v29 = vld [vmem:[%s2955_s1 + $0x118] sm:$0xff] }
  0x84   : > { %812 = vmatmul.f32.gmra.mxu0 %v2339_v24 }
  0x86   : > { %395 = vmatmul.f32.gmra.mxu1 %v2064_v46  ;;  %525 = vmatmul.f32.gmra.mxu2 %v2216_v36  ;;  %v1716_v46 = vld [vmem:[%s2955_s1 + $0x448] sm:$0xff] }
  0x87   : > { %1340 = vmatpush.msra.mxu0 %v1716_v46  ;;  %v1711_v46 = vld [vmem:[%s2955_s1 + $0x420] sm:$0xff] }
  0x88   : > { %685 = vmatmul.f32.gmra.mxu3 %v612_v12 }
  0x89   : > { %1341 = vmatpush.msra.mxu0 %v1715_v35 }
  0x8b   : > { %1342 = vmatpush.msra.mxu0 %v1714_v41 }
  0x8c   : > { %815 = vmatmul.f32.gmra.mxu0 %v2354_v27 }
  0x8d   : > { %1343 = vmatpush.msra.mxu0 %v1713_v56 }
  0x8e   : > { %398 = vmatmul.f32.gmra.mxu1 %v2113_v62  ;;  %528 = vmatmul.f32.gmra.mxu2 %v1975_v17  ;;  %v1699_v62 = vld [vmem:[%s2955_s1 + $0x2c0] sm:$0xff] }
  0x8f   : > { %1211 = vmatpush.msra.mxu3 %v1699_v62  ;;  %1344 = vmatpush.msra.mxu0 %v1712_v5  ;;  %v1694_v62 = vld [vmem:[%s2955_s1 + $0x298] sm:$0xff]  ;;  %v1661_v5 = vld [vmem:[%s2955_s1 + $0x390] sm:$0xff] }
  0x90   : > { %688 = vmatmul.f32.gmra.mxu3 %v2327_v22 }
  0x91   : > { %1212 = vmatpush.msra.mxu3 %v1698_v38  ;;  %1345 = vmatpush.msra.mxu0 %v1711_v46  ;;  %v1662_v38 = vld [vmem:[%s2955_s1 + $0x398] sm:$0xff] }
  0x94   : > { %818 = vmatmul.f32.gmra.mxu0 %v2364_v28 }
  0x96   : > { %401 = vmatmul.f32.gmra.mxu1 %v2164_v14  ;;  %531 = vmatmul.f32.gmra.mxu2 %v2018_v31  ;;  %v1682_v14 = vld [vmem:[%s2955_s1 + $0x138] sm:$0xff] }
  0x97   : > { %1082 = vmatpush.msra.mxu2 %v1682_v14  ;;  %v2535_v14 = vld [vmem:[%s1966_s9 + $0x89] sm:$0xff] }
  0x98   : > { %691 = vmatmul.f32.gmra.mxu3 %v2339_v24 }
  0x99   : > { %1083 = vmatpush.msra.mxu2 %v1681_v43 }
  0x9b   : > { %1084 = vmatpush.msra.mxu2 %v1680_v57 }
  0x9c   : > { %821 = vmatmul.f32.gmra.mxu0 %v2380_v33 }
  0x9e   : > { %404 = vmatmul.f32.gmra.mxu1 %v2216_v36  ;;  %534 = vmatmul.f32.gmra.mxu2 %v2067_v47  ;;  %v1666_v36 = vld [vmem:[%s2955_s1 + $0x3b8] sm:$0xff] }
  0x9f   : > { %922 = vmatpush.msra.mxu1 %v1666_v36 }
  0xa0   : > { %694 = vmatmul.f32.gmra.mxu3 %v2354_v27 }
  0xa1   : > { %923 = vmatpush.msra.mxu1 %v1665_v45 }
  0xa3   : > { %924 = vmatpush.msra.mxu1 %v1664_v0  ;;  %v1693_v0 = vld [vmem:[%s2955_s1 + $0x290] sm:$0xff] }
  0xa4   : > { %824 = vmatmul.f32.gmra.mxu0 %v2396_v39 }
  0xa5   : > { %925 = vmatpush.msra.mxu1 %v1663_v18 }
  0xa6   : > { %407 = vmatmul.f32.gmra.mxu1 %v1975_v17  ;;  %537 = vmatmul.f32.gmra.mxu2 %v2116_v63  ;;  %v1697_v17 = vld [vmem:[%s2955_s1 + $0x2b0] sm:$0xff] }
  0xa7   : > { %1213 = vmatpush.msra.mxu3 %v1697_v17  ;;  %926 = vmatpush.msra.mxu1 %v1662_v38  ;;  %v1710_v17 = vld [vmem:[%s2955_s1 + $0x418] sm:$0xff]  ;;  %v1692_v38 = vld [vmem:[%s2955_s1 + $0x288] sm:$0xff] }
  0xa8   : > { %697 = vmatmul.f32.gmra.mxu3 %v2364_v28  ;;  %1346 = vmatpush.msra.mxu0 %v1710_v17  ;;  %v2602_v17 = vld [vmem:[%s1966_s9 + $0xa1] sm:$0xff] }
  0xa9   : > { %1214 = vmatpush.msra.mxu3 %v1696_v58  ;;  %927 = vmatpush.msra.mxu1 %v1661_v5 }
  0xab   : > { %v2414_v44 = vpop.f32.mrf.mxu1  ;;  %1215 = vmatpush.msra.mxu3 %v1695_v13  ;;  %v2582_v13 = vld [vmem:[%s1966_s9 + $0x99] sm:$0xff] }
  0xac   : > { %827 = vmatmul.f32.gmra.mxu0 %v2409_v42 }
  0xad   : > { %1216 = vmatpush.msra.mxu3 %v1694_v62  ;;  %v1676_v62 = vld [vmem:[%s2955_s1 + $0x108] sm:$0xff] }
  0xae   : > { %410 = vmatmul.f32.gmra.mxu1 %v2018_v31  ;;  %540 = vmatmul.f32.gmra.mxu2 %v2167_v15 }
  0xaf   : > { %1217 = vmatpush.msra.mxu3 %v1693_v0 }
  0xb0   : > { %700 = vmatmul.f32.gmra.mxu3 %v2380_v33 }
  0xb1   : > { %v311_v49 = vpop.f32.mrf.mxu2  ;;  %v2431_v51 = vpop.f32.mrf.mxu0  ;;  %1218 = vmatpush.msra.mxu3 %v1692_v38 }
  0xb2   : > { %v2437_v31 = vadd.f32 %v2428_v48, %v311_v49 }
  0xb3   : > { %v2439_v53 = vpop.f32.mrf.mxu1  ;;  %v329_v54 = vpop.f32.mrf.mxu3 }
  0xb4   : > { %v2442_v55 = vadd.f32 %v2428_v48, %v329_v54  ;;  %830 = vmatmul.f32.gmra.mxu0 %v2434_v52  ;;  %v2558_v54 = vld [vmem:[%s1966_s9 + $0x91] sm:$0xff] }
  0xb6   : > { %413 = vmatmul.f32.gmra.mxu1 %v2067_v47  ;;  %543 = vmatmul.f32.gmra.mxu2 %v2219_v37 }
  0xb8   : > { %703 = vmatmul.f32.gmra.mxu3 %v2396_v39 }
  0xb9   : > { %v314_v59 = vpop.f32.mrf.mxu2  ;;  %v2457_v60 = vpop.f32.mrf.mxu0 }
  0xba   : > { %v2463_v47 = vadd.f32 %v2428_v48, %v314_v59  ;;  %v279_v46 = vadd.f32 %v2428_v48, %v2457_v60 }
  0xbb   : > { %v2468_v1 = vpop.f32.mrf.mxu1  ;;  %v332_v3 = vpop.f32.mrf.mxu3 }
  0xbc   : > { %v2471_v4 = vadd.f32 %v2428_v48, %v332_v3  ;;  %833 = vmatmul.f32.gmra.mxu0 %v2460_v61  ;;  %v276_v3 = vadd.f32 %v2428_v48, %v2431_v51 }
  0xbe   : > { %416 = vmatmul.f32.gmra.mxu1 %v2116_v63  ;;  %546 = vmatmul.f32.gmra.mxu2 %v1981_v19  ;;  %v1679_v63 = vld [vmem:[%s2955_s1 + $0x120] sm:$0xff] }
  0xbf   : > { %1085 = vmatpush.msra.mxu2 %v1679_v63 }
  0xc0   : > { %706 = vmatmul.f32.gmra.mxu3 %v2409_v42 }
  0xc1   : > { %v317_v6 = vpop.f32.mrf.mxu2  ;;  %v2480_v7 = vpop.f32.mrf.mxu0  ;;  %1086 = vmatpush.msra.mxu2 %v1678_v29 }
  0xc2   : > { %v2486_v9 = vadd.f32 %v2428_v48, %v317_v6 }
  0xc3   : > { %v2491_v10 = vpop.f32.mrf.mxu1  ;;  %v335_v11 = vpop.f32.mrf.mxu3 }
  0xc4   : > { %v2494_v12 = vadd.f32 %v2428_v48, %v335_v11  ;;  %836 = vmatmul.f32.gmra.mxu0 %v2483_v8 }
  0xc6   : > { %419 = vmatmul.f32.gmra.mxu1 %v2167_v15  ;;  %549 = vmatmul.f32.gmra.mxu2 %v2027_v34 }
  0xc8   : > { %709 = vmatmul.f32.gmra.mxu3 %v2434_v52 }
  0xc9   : > { %v320_v20 = vpop.f32.mrf.mxu2  ;;  %v2506_v16 = vpop.f32.mrf.mxu0 }
  0xca   : > { %v2512_v30 = vadd.f32 %v2428_v48, %v320_v20 }
  0xcb   : > { %v2514_v25 = vpop.f32.mrf.mxu1  ;;  %v338_v15 = vpop.f32.mrf.mxu3 }
  0xcc   : > { %v2517_v26 = vadd.f32 %v2428_v48, %v338_v15  ;;  %839 = vmatmul.f32.gmra.mxu0 %v2509_v23 }
  0xce   : > { %422 = vmatmul.f32.gmra.mxu1 %v2219_v37  ;;  %552 = vmatmul.f32.gmra.mxu2 %v2076_v50 }
  0xd0   : > { %712 = vmatmul.f32.gmra.mxu3 %v2460_v61 }
  0xd1   : > { %v323_v32 = vpop.f32.mrf.mxu2  ;;  %v2532_v35 = vpop.f32.mrf.mxu0 }
  0xd2   : > { %v2538_v37 = vadd.f32 %v2428_v48, %v323_v32 }
  0xd3   : > { %v2543_v36 = vpop.f32.mrf.mxu1  ;;  %v341_v41 = vpop.f32.mrf.mxu3 }
  0xd4   : > { %v2546_v43 = vadd.f32 %v2428_v48, %v341_v41  ;;  %842 = vmatmul.f32.gmra.mxu0 %v2535_v14 }
  0xd6   : > { %425 = vmatmul.f32.gmra.mxu1 %v1981_v19  ;;  %555 = vmatmul.f32.gmra.mxu2 %v2125_v2  ;;  %v1677_v19 = vld [vmem:[%s2955_s1 + $0x110] sm:$0xff] }
  0xd7   : > { %1087 = vmatpush.msra.mxu2 %v1677_v19 }
  0xd8   : > { %715 = vmatmul.f32.gmra.mxu3 %v2483_v8 }
  0xd9   : > { %v326_v45 = vpop.f32.mrf.mxu2  ;;  %v2555_v49 = vpop.f32.mrf.mxu0  ;;  %1088 = vmatpush.msra.mxu2 %v1676_v62  ;;  %v1691_v62 = vld [vmem:[%s2955_s1 + $0x280] sm:$0xff] }
  0xda   : > { %v2561_v56 = vadd.f32 %v2428_v48, %v326_v45  ;;  %v1660_v45 = vld [vmem:[%s2955_s1 + $0x388] sm:$0xff]  ;;  %1219 = vmatpush.msra.mxu3 %v1691_v62 }
  0xdb   : > { %v344_v57 = vpop.f32.mrf.mxu3  ;;  %v381_v58 = vpop.f32.mrf.mxu1  ;;  %928 = vmatpush.msra.mxu1 %v1660_v45 }
  0xdc   : > { %v2567_v59 = vadd.f32 %v2428_v48, %v344_v57  ;;  %845 = vmatmul.f32.gmra.mxu0 %v2558_v54  ;;  %v453_v6 = vadd.f32 %v381_v58, %v276_v3  ;;  %v232_v58 = vld [vmem:[%s1966_s9 + $0xc0] sm:$0xff]  ;;  %v282_v3 = vadd.f32 %v2428_v48, %v2480_v7 }
  0xdd   : > { %v1675_v7 = vld [vmem:[%s2955_s1 + $0x100] sm:$0xff] }
  0xde   : > { %428 = vmatmul.f32.gmra.mxu1 %v2027_v34  ;;  %558 = vmatmul.f32.gmra.mxu2 %v2177_v21  ;;  %v1709_v34 = vld [vmem:[%s2955_s1 + $0x410] sm:$0xff] }
  0xdf   : > { %1347 = vmatpush.msra.mxu0 %v1709_v34  ;;  %v233_v34 = vld [vmem:[%s1966_s9 + $0xc8] sm:$0xff]  ;;  %1089 = vmatpush.msra.mxu2 %v1675_v7 }
  0xe0   : > { %718 = vmatmul.f32.gmra.mxu3 %v2509_v23 }
  0xe1   : > { %v511_v63 = vpop.f32.mrf.mxu2  ;;  %v801_v11 = vpop.f32.mrf.mxu0 }
  0xe2   : > { %v583_v18 = vadd.f32 %v511_v63, %v453_v6  ;;  %v1708_v63 = vld [vmem:[%s2955_s1 + $0x408] sm:$0xff] }
  0xe3   : > { %v384_v20 = vpop.f32.mrf.mxu1  ;;  %v671_v15 = vpop.f32.mrf.mxu3  ;;  %1348 = vmatpush.msra.mxu0 %v1708_v63  ;;  %v288_v63 = vadd.f32 %v2428_v48, %v2532_v35 }
  0xe4   : > { %v743_v51 = vadd.f32 %v671_v15, %v583_v18  ;;  %848 = vmatmul.f32.gmra.mxu0 %v2582_v13  ;;  %v454_v32 = vadd.f32 %v384_v20, %v279_v46  ;;  %v2619_v20 = vld [vmem:[%s1966_s9 + $0xa9] sm:$0xff] }
  0xe6   : > { %v2590_v29 = vadd.f32 %v801_v11, %v743_v51  ;;  %431 = vmatmul.f32.gmra.mxu1 %v2076_v50  ;;  %561 = vmatmul.f32.gmra.mxu2 %v2229_v40 }
  0xe8   : > { %721 = vmatmul.f32.gmra.mxu3 %v2535_v14 }
  0xe9   : > { %v514_v60 = vpop.f32.mrf.mxu2  ;;  %v804_v41 = vpop.f32.mrf.mxu0 }
  0xea   : > { %v584_v50 = vadd.f32 %v514_v60, %v454_v32  ;;  %v285_v32 = vadd.f32 %v2428_v48, %v2506_v16  ;;  %v1659_v60 = vld [vmem:[%s2955_s1 + $0x380] sm:$0xff] }
  0xeb   : > { %v387_v19 = vpop.f32.mrf.mxu1  ;;  %v674_v57 = vpop.f32.mrf.mxu3  ;;  %929 = vmatpush.msra.mxu1 %v1659_v60 }
  0xec   : > { %v744_v0 = vadd.f32 %v674_v57, %v584_v50  ;;  %851 = vmatmul.f32.gmra.mxu0 %v2602_v17  ;;  %v455_v6 = vadd.f32 %v387_v19, %v282_v3  ;;  %v2639_v19 = vld [vmem:[%s1966_s9 + $0xb1] sm:$0xff] }
  0xed   : > { %v234_v3 = vld [vmem:[%s1966_s9 + $0xd0] sm:$0xff] }
  0xee   : > { %v2611_v5 = vadd.f32 %v804_v41, %v744_v0  ;;  %434 = vmatmul.f32.gmra.mxu1 %v2125_v2  ;;  %564 = vmatmul.f32.gmra.mxu2 %v232_v58 }
  0xf0   : > { %724 = vmatmul.f32.gmra.mxu3 %v2558_v54 }
  0xf1   : > { %v517_v11 = vpop.f32.mrf.mxu2  ;;  %v807_v18 = vpop.f32.mrf.mxu0 }
  0xf2   : > { %v585_v15 = vadd.f32 %v517_v11, %v455_v6 }
  0xf3   : > { %v390_v51 = vpop.f32.mrf.mxu1  ;;  %v677_v2 = vpop.f32.mrf.mxu3 }
  0xf4   : > { %v745_v46 = vadd.f32 %v677_v2, %v585_v15  ;;  %854 = vmatmul.f32.gmra.mxu0 %v2619_v20  ;;  %v456_v41 = vadd.f32 %v390_v51, %v285_v32  ;;  %v2653_v51 = vld [vmem:[%s1966_s9 + $0xb9] sm:$0xff] }
  0xf5   : > { %v235_v32 = vld [vmem:[%s1966_s9 + $0xd8] sm:$0xff] }
  0xf6   : > { %v2631_v38 = vadd.f32 %v807_v18, %v745_v46  ;;  %437 = vmatmul.f32.gmra.mxu1 %v2177_v21  ;;  %567 = vmatmul.f32.gmra.mxu2 %v233_v34  ;;  %v1707_v21 = vld [vmem:[%s2955_s1 + $0x400] sm:$0xff] }
  0xf7   : > { %1349 = vmatpush.msra.mxu0 %v1707_v21  ;;  %v236_v21 = vld [vmem:[%s1966_s9 + $0xe0] sm:$0xff] }
  0xf8   : > { %727 = vmatmul.f32.gmra.mxu3 %v2582_v13 }
  0xf9   : > { %v520_v50 = vpop.f32.mrf.mxu2  ;;  %v810_v45 = vpop.f32.mrf.mxu0 }
  0xfa   : > { %v586_v57 = vadd.f32 %v520_v50, %v456_v41 }
  0xfb   : > { %v393_v16 = vpop.f32.mrf.mxu1  ;;  %v680_v0 = vpop.f32.mrf.mxu3 }
  0xfc   : > { %v746_v6 = vadd.f32 %v680_v0, %v586_v57  ;;  %857 = vmatmul.f32.gmra.mxu0 %v2639_v19  ;;  %v457_v18 = vadd.f32 %v393_v16, %v288_v63  ;;  %v2663_v57 = vld [vmem:[%s1966_s9 + $0xc1] sm:$0xff] }
  0xfe   : > { %v2648_v11 = vadd.f32 %v810_v45, %v746_v6  ;;  %440 = vmatmul.f32.gmra.mxu1 %v2229_v40  ;;  %570 = vmatmul.f32.gmra.mxu2 %v234_v3  ;;  %v291_v40 = vadd.f32 %v2428_v48, %v2555_v49  ;;  %v294_v49 = vadd.f32 %v2428_v48, %v2414_v44 }
  0xff   : > { %v297_v44 = vadd.f32 %v2428_v48, %v2439_v53  ;;  %v1030_v53 = vld [vmem:[%s1966_s9 + $0x1a] sm:$0xff] }
 0x100   : > { %730 = vmatmul.f32.gmra.mxu3 %v2602_v17 }
 0x101   : > { %v523_v15 = vpop.f32.mrf.mxu2  ;;  %v813_v7 = vpop.f32.mrf.mxu0 }
 0x102   : > { %v587_v2 = vadd.f32 %v523_v15, %v457_v18 }
 0x103   : > { %v396_v46 = vpop.f32.mrf.mxu1  ;;  %v683_v62 = vpop.f32.mrf.mxu3 }
 0x104   : > { %v747_v60 = vadd.f32 %v683_v62, %v587_v2  ;;  %860 = vmatmul.f32.gmra.mxu0 %v2653_v51  ;;  %v458_v41 = vadd.f32 %v396_v46, %v291_v40  ;;  %v2673_v2 = vld [vmem:[%s1966_s9 + $0xc9] sm:$0xff] }
 0x106   : > { %v2659_v35 = vadd.f32 %v813_v7, %v747_v60  ;;  %443 = vmatmul.f32.gmra.mxu1 %v232_v58  ;;  %573 = vmatmul.f32.gmra.mxu2 %v235_v32  ;;  %v237_v60 = vld [vmem:[%s1966_s9 + $0xe8] sm:$0xff] }
 0x108   : > { %733 = vmatmul.f32.gmra.mxu3 %v2619_v20 }
 0x109   : > { %v526_v50 = vpop.f32.mrf.mxu2  ;;  %v816_v45 = vpop.f32.mrf.mxu0 }
 0x10a   : > { %v588_v16 = vadd.f32 %v526_v50, %v458_v41 }
 0x10b   : > { %v399_v0 = vpop.f32.mrf.mxu1  ;;  %v686_v6 = vpop.f32.mrf.mxu3 }
 0x10c   : > { %v748_v63 = vadd.f32 %v686_v6, %v588_v16  ;;  %863 = vmatmul.f32.gmra.mxu0 %v2663_v57  ;;  %v459_v18 = vadd.f32 %v399_v0, %v294_v49  ;;  %v2683_v16 = vld [vmem:[%s1966_s9 + $0xd1] sm:$0xff] }
 0x10e   : > { %v2669_v58 = vadd.f32 %v816_v45, %v748_v63  ;;  %446 = vmatmul.f32.gmra.mxu1 %v233_v34  ;;  %576 = vmatmul.f32.gmra.mxu2 %v236_v21  ;;  %v1027_v63 = vld [vmem:[%s1966_s9 + $0x2] sm:$0xff] }
 0x110   : > { %736 = vmatmul.f32.gmra.mxu3 %v2639_v19 }
 0x111   : > { %v529_v15 = vpop.f32.mrf.mxu2  ;;  %v819_v7 = vpop.f32.mrf.mxu0 }
 0x112   : > { %v589_v46 = vadd.f32 %v529_v15, %v459_v18 }
 0x113   : > { %v402_v62 = vpop.f32.mrf.mxu1  ;;  %v689_v32 = vpop.f32.mrf.mxu3 }
 0x114   : > { %v749_v40 = vadd.f32 %v689_v32, %v589_v46  ;;  %866 = vmatmul.f32.gmra.mxu0 %v2673_v2  ;;  %v460_v41 = vadd.f32 %v402_v62, %v297_v44  ;;  %v2694_v62 = vld [vmem:[%s1966_s9 + $0x32] sm:$0xff]  ;;  %v1028_v44 = vld [vmem:[%s1966_s9 + $0xa] sm:$0xff] }
 0x116   : > { %v2679_v34 = vadd.f32 %v819_v7, %v749_v40  ;;  %449 = vmatmul.f32.gmra.mxu1 %v234_v3  ;;  %579 = vmatmul.f32.gmra.mxu2 %v237_v60  ;;  %v300_v3 = vadd.f32 %v2428_v48, %v2468_v1  ;;  %v1031_v1 = vld [vmem:[%s1966_s9 + $0x22] sm:$0xff] }
 0x118   : > { %739 = vmatmul.f32.gmra.mxu3 %v2653_v51 }
 0x119   : > { %v532_v50 = vpop.f32.mrf.mxu2  ;;  %v822_v45 = vpop.f32.mrf.mxu0 }
 0x11a   : > { %v590_v0 = vadd.f32 %v532_v50, %v460_v41 }
 0x11b   : > { %v405_v6 = vpop.f32.mrf.mxu1  ;;  %v692_v21 = vpop.f32.mrf.mxu3 }
 0x11c   : > { %v750_v49 = vadd.f32 %v692_v21, %v590_v0  ;;  %869 = vmatmul.f32.gmra.mxu0 %v2683_v16  ;;  %v461_v15 = vadd.f32 %v405_v6, %v300_v3  ;;  %v2705_v21 = vld [vmem:[%s1966_s9 + $0x3a] sm:$0xff] }
 0x11e   : > { %v2690_v18 = vadd.f32 %v822_v45, %v750_v49  ;;  %930 = vmatmul.f32.vlgmr.msra.gmra.mxu1 %v2327_v22  ;;  %1090 = vmatmul.f32.vlgmr.msra.gmra.mxu2 %v1027_v63  ;;  %v303_v22 = vadd.f32 %v2428_v48, %v2491_v10  ;;  %v1032_v10 = vld [vmem:[%s1966_s9 + $0x2a] sm:$0xff] }
 0x120   : > { %1220 = vmatmul.f32.vlgmr.msra.gmra.mxu3 %v1030_v53 }
 0x121   : > { %v535_v7 = vpop.f32.mrf.mxu2  ;;  %v825_v46 = vpop.f32.mrf.mxu0 }
 0x122   : > { %v591_v32 = vadd.f32 %v535_v7, %v461_v15  ;;  %v1029_v15 = vld [vmem:[%s1966_s9 + $0x12] sm:$0xff] }
 0x123   : > { %v408_v60 = vpop.f32.mrf.mxu1  ;;  %v695_v40 = vpop.f32.mrf.mxu3 }
 0x124   : > { %v751_v41 = vadd.f32 %v695_v40, %v591_v32  ;;  %1350 = vmatmul.f32.vlgmr.msra.gmra.mxu0 %v2694_v62  ;;  %v462_v45 = vadd.f32 %v408_v60, %v303_v22 }
 0x126   : > { %v2701_v50 = vadd.f32 %v825_v46, %v751_v41  ;;  %933 = vmatmul.f32.gmra.mxu1 %v2339_v24  ;;  %1093 = vmatmul.f32.gmra.mxu2 %v1028_v44  ;;  %v306_v46 = vadd.f32 %v2428_v48, %v2514_v25  ;;  %v2716_v44 = vld [vmem:[%s1966_s9 + $0x42] sm:$0xff]  ;;  %v309_v25 = vadd.f32 %v2428_v48, %v2543_v36 }
 0x128   : > { %1223 = vmatmul.f32.gmra.mxu3 %v1031_v1 }
 0x129   : > { %v538_v0 = vpop.f32.mrf.mxu2  ;;  %v828_v6 = vpop.f32.mrf.mxu0 }
 0x12a   : > { %v592_v63 = vadd.f32 %v538_v0, %v462_v45 }
 0x12b   : > { %v411_v49 = vpop.f32.mrf.mxu1  ;;  %v698_v3 = vpop.f32.mrf.mxu3 }
 0x12c   : > { %v752_v7 = vadd.f32 %v698_v3, %v592_v63  ;;  %1353 = vmatmul.f32.gmra.mxu0 %v2705_v21  ;;  %v463_v32 = vadd.f32 %v411_v49, %v306_v46  ;;  %v2726_v3 = vld [vmem:[%s1966_s9 + $0x4a] sm:$0xff] }
 0x12e   : > { %v2712_v24 = vadd.f32 %v828_v6, %v752_v7  ;;  %936 = vmatmul.f32.gmra.mxu1 %v2354_v27  ;;  %1096 = vmatmul.f32.gmra.mxu2 %v1029_v15 }
 0x130   : > { %1226 = vmatmul.f32.gmra.mxu3 %v1032_v10 }
 0x131   : > { %v541_v60 = vpop.f32.mrf.mxu2  ;;  %v831_v40 = vpop.f32.mrf.mxu0 }
 0x132   : > { %v593_v41 = vadd.f32 %v541_v60, %v463_v32  ;;  %v2735_v60 = vld [vmem:[%s1966_s9 + $0x52] sm:$0xff] }
 0x133   : > { %v414_v22 = vpop.f32.mrf.mxu1  ;;  %v701_v45 = vpop.f32.mrf.mxu3 }
 0x134   : > { %v753_v0 = vadd.f32 %v701_v45, %v593_v41  ;;  %1356 = vmatmul.f32.gmra.mxu0 %v2716_v44  ;;  %v464_v27 = vadd.f32 %v414_v22, %v309_v25  ;;  %v2744_v25 = vld [vmem:[%s1966_s9 + $0x5a] sm:$0xff] }
 0x136   : > { %v2721_v6 = vadd.f32 %v831_v40, %v753_v0  ;;  %939 = vmatmul.f32.gmra.mxu1 %v2364_v28  ;;  %1099 = vmatmul.f32.gmra.mxu2 %v1030_v53 }
 0x138   : > { %1229 = vmatmul.f32.gmra.mxu3 %v2694_v62 }
 0x139   : > { %v544_v63 = vpop.f32.mrf.mxu2  ;;  %v834_v49 = vpop.f32.mrf.mxu0 }
 0x13a   : > { %v594_v15 = vadd.f32 %v544_v63, %v464_v27 }
 0x13b   : > { %v417_v7 = vpop.f32.mrf.mxu1  ;;  %v704_v46 = vpop.f32.mrf.mxu3 }
 0x13c   : > { %v754_v32 = vadd.f32 %v704_v46, %v594_v15  ;;  %1359 = vmatmul.f32.gmra.mxu0 %v2726_v3  ;;  %v465_v28 = vadd.f32 %v417_v7, %v2437_v31  ;;  %v2754_v46 = vld [vmem:[%s1966_s9 + $0x62] sm:$0xff] }
 0x13e   : > { %v2729_v48 = vadd.f32 %v834_v49, %v754_v32  ;;  %942 = vmatmul.f32.gmra.mxu1 %v2380_v33  ;;  %1102 = vmatmul.f32.gmra.mxu2 %v1031_v1 }
 0x140   : > { %1232 = vmatmul.f32.gmra.mxu3 %v2705_v21 }
 0x141   : > { %v547_v36 = vpop.f32.mrf.mxu2  ;;  %v837_v53 = vpop.f32.mrf.mxu0 }
 0x142   : > { %v595_v40 = vadd.f32 %v547_v36, %v465_v28 }
 0x143   : > { %v420_v41 = vpop.f32.mrf.mxu1  ;;  %v707_v22 = vpop.f32.mrf.mxu3 }
 0x144   : > { %v755_v45 = vadd.f32 %v707_v22, %v595_v40  ;;  %1362 = vmatmul.f32.gmra.mxu0 %v2735_v60  ;;  %v466_v33 = vadd.f32 %v420_v41, %v2463_v47  ;;  %v2764_v41 = vld [vmem:[%s1966_s9 + $0x6a] sm:$0xff] }
 0x146   : > { %v2738_v0 = vadd.f32 %v837_v53, %v755_v45  ;;  %945 = vmatmul.f32.gmra.mxu1 %v2396_v39  ;;  %1105 = vmatmul.f32.gmra.mxu2 %v1032_v10 }
 0x148   : > { %1235 = vmatmul.f32.gmra.mxu3 %v2716_v44 }
 0x149   : > { %v550_v31 = vpop.f32.mrf.mxu2  ;;  %v840_v1 = vpop.f32.mrf.mxu0 }
 0x14a   : > { %v596_v27 = vadd.f32 %v550_v31, %v466_v33 }
 0x14b   : > { %v423_v63 = vpop.f32.mrf.mxu1  ;;  %v710_v49 = vpop.f32.mrf.mxu3 }
 0x14c   : > { %v756_v15 = vadd.f32 %v710_v49, %v596_v27  ;;  %1365 = vmatmul.f32.gmra.mxu0 %v2744_v25  ;;  %v467_v39 = vadd.f32 %v423_v63, %v2486_v9  ;;  %v2774_v27 = vld [vmem:[%s1966_s9 + $0x72] sm:$0xff] }
 0x14e   : > { %v2747_v7 = vadd.f32 %v840_v1, %v756_v15  ;;  %948 = vmatmul.f32.gmra.mxu1 %v2409_v42  ;;  %1108 = vmatmul.f32.gmra.mxu2 %v2694_v62 }
 0x150   : > { %1238 = vmatmul.f32.gmra.mxu3 %v2726_v3 }
 0x151   : > { %v553_v47 = vpop.f32.mrf.mxu2  ;;  %v843_v10 = vpop.f32.mrf.mxu0 }
 0x152   : > { %v597_v32 = vadd.f32 %v553_v47, %v467_v39 }
 0x153   : > { %v426_v28 = vpop.f32.mrf.mxu1  ;;  %v713_v36 = vpop.f32.mrf.mxu3 }
 0x154   : > { %v757_v53 = vadd.f32 %v713_v36, %v597_v32  ;;  %1368 = vmatmul.f32.gmra.mxu0 %v2754_v46  ;;  %v468_v42 = vadd.f32 %v426_v28, %v2512_v30 }
 0x156   : > { %v2757_v40 = vadd.f32 %v843_v10, %v757_v53  ;;  %951 = vmatmul.f32.gmra.mxu1 %v2434_v52  ;;  %1111 = vmatmul.f32.gmra.mxu2 %v2705_v21  ;;  %v2784_v10 = vld [vmem:[%s1966_s9 + $0x7a] sm:$0xff] }
 0x158   : > { %1241 = vmatmul.f32.gmra.mxu3 %v2735_v60 }
 0x159   : > { %v556_v9 = vpop.f32.mrf.mxu2  ;;  %v846_v62 = vpop.f32.mrf.mxu0 }
 0x15a   : > { %v598_v22 = vadd.f32 %v556_v9, %v468_v42  ;;  %v2794_v9 = vld [vmem:[%s1966_s9 + $0x82] sm:$0xff] }
 0x15b   : > { %v429_v45 = vpop.f32.mrf.mxu1  ;;  %v716_v33 = vpop.f32.mrf.mxu3 }
 0x15c   : > { %v758_v31 = vadd.f32 %v716_v33, %v598_v22  ;;  %1371 = vmatmul.f32.gmra.mxu0 %v2764_v41  ;;  %v469_v52 = vadd.f32 %v429_v45, %v2538_v37 }
 0x15e   : > { %v2767_v1 = vadd.f32 %v846_v62, %v758_v31  ;;  %954 = vmatmul.f32.gmra.mxu1 %v2460_v61  ;;  %1114 = vmatmul.f32.gmra.mxu2 %v2716_v44 }
 0x160   : > { %1244 = vmatmul.f32.gmra.mxu3 %v2744_v25 }
 0x161   : > { %v559_v30 = vpop.f32.mrf.mxu2  ;;  %v849_v21 = vpop.f32.mrf.mxu0 }
 0x162   : > { %v599_v63 = vadd.f32 %v559_v30, %v469_v52  ;;  %v2804_v52 = vld [vmem:[%s1966_s9 + $0x8a] sm:$0xff] }
 0x163   : > { %v432_v49 = vpop.f32.mrf.mxu1  ;;  %v719_v15 = vpop.f32.mrf.mxu3 }
 0x164   : > { %v759_v39 = vadd.f32 %v719_v15, %v599_v63  ;;  %1374 = vmatmul.f32.gmra.mxu0 %v2774_v27  ;;  %v470_v61 = vadd.f32 %v432_v49, %v2561_v56 }
 0x166   : > { %v2777_v47 = vadd.f32 %v849_v21, %v759_v39  ;;  %957 = vmatmul.f32.gmra.mxu1 %v2483_v8  ;;  %1117 = vmatmul.f32.gmra.mxu2 %v2726_v3  ;;  %v2814_v39 = vld [vmem:[%s1966_s9 + $0x92] sm:$0xff] }
 0x168   : > { %1247 = vmatmul.f32.gmra.mxu3 %v2754_v46 }
 0x169   : > { %v562_v37 = vpop.f32.mrf.mxu2  ;;  %v852_v44 = vpop.f32.mrf.mxu0 }
 0x16a   : > { %v600_v32 = vadd.f32 %v562_v37, %v470_v61 }
 0x16b   : > { %v435_v28 = vpop.f32.mrf.mxu1  ;;  %v722_v36 = vpop.f32.mrf.mxu3 }
 0x16c   : > { %v760_v53 = vadd.f32 %v722_v36, %v600_v32  ;;  %1377 = vmatmul.f32.gmra.mxu0 %v2784_v10  ;;  %v471_v8 = vadd.f32 %v435_v28, %v2442_v55  ;;  %v2824_v36 = vld [vmem:[%s1966_s9 + $0x9a] sm:$0xff] }
 0x16e   : > { %v2787_v42 = vadd.f32 %v852_v44, %v760_v53  ;;  %960 = vmatmul.f32.gmra.mxu1 %v2509_v23  ;;  %1120 = vmatmul.f32.gmra.mxu2 %v2735_v60 }
 0x170   : > { %1250 = vmatmul.f32.gmra.mxu3 %v2764_v41 }
 0x171   : > { %v565_v56 = vpop.f32.mrf.mxu2  ;;  %v855_v3 = vpop.f32.mrf.mxu0 }
 0x172   : > { %v601_v62 = vadd.f32 %v565_v56, %v471_v8 }
 0x173   : > { %v438_v22 = vpop.f32.mrf.mxu1  ;;  %v725_v45 = vpop.f32.mrf.mxu3 }
 0x174   : > { %v761_v33 = vadd.f32 %v725_v45, %v601_v62  ;;  %1380 = vmatmul.f32.gmra.mxu0 %v2794_v9  ;;  %v472_v55 = vadd.f32 %v438_v22, %v2471_v4  ;;  %v2834_v22 = vld [vmem:[%s1966_s9 + $0xa2] sm:$0xff] }
 0x176   : > { %v2797_v31 = vadd.f32 %v855_v3, %v761_v33  ;;  %963 = vmatmul.f32.gmra.mxu1 %v2535_v14  ;;  %1123 = vmatmul.f32.gmra.mxu2 %v2744_v25 }
 0x178   : > { %1253 = vmatmul.f32.gmra.mxu3 %v2774_v27 }
 0x179   : > { %v568_v23 = vpop.f32.mrf.mxu2  ;;  %v858_v60 = vpop.f32.mrf.mxu0 }
 0x17a   : > { %v602_v30 = vadd.f32 %v568_v23, %v472_v55 }
 0x17b   : > { %v441_v21 = vpop.f32.mrf.mxu1  ;;  %v728_v63 = vpop.f32.mrf.mxu3 }
 0x17c   : > { %v762_v49 = vadd.f32 %v728_v63, %v602_v30  ;;  %1383 = vmatmul.f32.gmra.mxu0 %v2804_v52  ;;  %v473_v4 = vadd.f32 %v441_v21, %v2494_v12  ;;  %v2845_v30 = vld [vmem:[%s1966_s9 + $0xaa] sm:$0xff] }
 0x17e   : > { %v2807_v15 = vadd.f32 %v858_v60, %v762_v49  ;;  %966 = vmatmul.f32.gmra.mxu1 %v2558_v54  ;;  %1126 = vmatmul.f32.gmra.mxu2 %v2754_v46 }
 0x180   : > { %1256 = vmatmul.f32.gmra.mxu3 %v2784_v10 }
 0x181   : > { %v571_v14 = vpop.f32.mrf.mxu2  ;;  %v861_v25 = vpop.f32.mrf.mxu0 }
 0x182   : > { %v603_v61 = vadd.f32 %v571_v14, %v473_v4 }
 0x183   : > { %v444_v37 = vpop.f32.mrf.mxu1  ;;  %v731_v44 = vpop.f32.mrf.mxu3 }
 0x184   : > { %v763_v32 = vadd.f32 %v731_v44, %v603_v61  ;;  %1386 = vmatmul.f32.gmra.mxu0 %v2814_v39  ;;  %v474_v12 = vadd.f32 %v444_v37, %v2517_v26 }
 0x186   : > { %v2817_v28 = vadd.f32 %v861_v25, %v763_v32  ;;  %969 = vmatmul.f32.gmra.mxu1 %v2582_v13  ;;  %1129 = vmatmul.f32.gmra.mxu2 %v2764_v41  ;;  %v2856_v25 = vld [vmem:[%s1966_s9 + $0xb2] sm:$0xff] }
 0x188   : > { %1259 = vmatmul.f32.gmra.mxu3 %v2794_v9 }
 0x189   : > { %v574_v54 = vpop.f32.mrf.mxu2  ;;  %v864_v46 = vpop.f32.mrf.mxu0 }
 0x18a   : > { %v604_v53 = vadd.f32 %v574_v54, %v474_v12 }
 0x18b   : > { %v447_v8 = vpop.f32.mrf.mxu1  ;;  %v734_v56 = vpop.f32.mrf.mxu3 }
 0x18c   : > { %v764_v3 = vadd.f32 %v734_v56, %v604_v53  ;;  %1389 = vmatmul.f32.gmra.mxu0 %v2824_v36  ;;  %v475_v26 = vadd.f32 %v447_v8, %v2546_v43 }
 0x18e   : > { %v2827_v62 = vadd.f32 %v864_v46, %v764_v3  ;;  %972 = vmatmul.f32.gmra.mxu1 %v2602_v17  ;;  %1132 = vmatmul.f32.gmra.mxu2 %v2774_v27  ;;  %v2869_v46 = vld [vmem:[%s1966_s9 + $0xba] sm:$0xff] }
 0x190   : > { %1262 = vmatmul.f32.gmra.mxu3 %v2804_v52 }
 0x191   : > { %v577_v13 = vpop.f32.mrf.mxu2  ;;  %v867_v41 = vpop.f32.mrf.mxu0 }
 0x192   : > { %v605_v45 = vadd.f32 %v577_v13, %v475_v26 }
 0x193   : > { %v450_v33 = vpop.f32.mrf.mxu1  ;;  %v737_v55 = vpop.f32.mrf.mxu3 }
 0x194   : > { %v765_v23 = vadd.f32 %v737_v55, %v605_v45  ;;  %1392 = vmatmul.f32.gmra.mxu0 %v2834_v22  ;;  %v476_v43 = vadd.f32 %v450_v33, %v2567_v59 }
 0x196   : > { %v2838_v17 = vadd.f32 %v867_v41, %v765_v23  ;;  %975 = vmatmul.f32.gmra.mxu1 %v2619_v20  ;;  %1135 = vmatmul.f32.gmra.mxu2 %v2784_v10  ;;  %v1051_v41 = vld [vmem:[%s1966_s9 + $0xc2] sm:$0xff] }
 0x198   : > { %1265 = vmatmul.f32.gmra.mxu3 %v2814_v39 }
 0x199   : > { %v580_v27 = vpop.f32.mrf.mxu2  ;;  %v870_v60 = vpop.f32.mrf.mxu0 }
 0x19a   : > { %v606_v21 = vadd.f32 %v580_v27, %v476_v43 }
 0x19b   : > { %v740_v63 = vpop.f32.mrf.mxu3  ;;  %v931_v49 = vpop.f32.mrf.mxu1 }
 0x19c   : > { %v766_v4 = vadd.f32 %v740_v63, %v606_v21  ;;  %1395 = vmatmul.f32.gmra.mxu0 %v2845_v30  ;;  %v1003_v59 = vadd.f32 %v931_v49, %v2590_v29 }
 0x19e   : > { %v2849_v20 = vadd.f32 %v870_v60, %v766_v4  ;;  %978 = vmatmul.f32.gmra.mxu1 %v2639_v19  ;;  %1138 = vmatmul.f32.gmra.mxu2 %v2794_v9  ;;  %v1052_v60 = vld [vmem:[%s1966_s9 + $0xca] sm:$0xff] }
 0x1a0   : > { %1268 = vmatmul.f32.gmra.mxu3 %v2824_v36 }
 0x1a1   : > { %v1091_v10 = vpop.f32.mrf.mxu2  ;;  %v1351_v14 = vpop.f32.mrf.mxu0 }
 0x1a2   : > { %v1163_v61 = vadd.f32 %v1091_v10, %v1003_v59 }
 0x1a3   : > { %v934_v37 = vpop.f32.mrf.mxu1  ;;  %v1221_v44 = vpop.f32.mrf.mxu3 }
 0x1a4   : > { %v1293_v32 = vadd.f32 %v1221_v44, %v1163_v61  ;;  %1398 = vmatmul.f32.gmra.mxu0 %v2856_v25  ;;  %v1004_v29 = vadd.f32 %v934_v37, %v2611_v5 }
 0x1a6   : > { %v1423_v19 = vadd.f32 %v1351_v14, %v1293_v32  ;;  %981 = vmatmul.f32.gmra.mxu1 %v2653_v51  ;;  %1141 = vmatmul.f32.gmra.mxu2 %v2804_v52  ;;  %v1053_v14 = vld [vmem:[%s1966_s9 + $0xd2] sm:$0xff] }
 0x1a7   : > { %v634_v32 = vld [vmem:[%s1966_s9 + $0xd9] sm:$0xff] }
 0x1a8   : > { %v1447_v9 = vmax.f32 %v1423_v19, 0.0  ;;  %1271 = vmatmul.f32.gmra.mxu3 %v2834_v22 }
 0x1a9   : > { %v1094_v12 = vpop.f32.mrf.mxu2  ;;  %v1354_v54 = vpop.f32.mrf.mxu0 }
 0x1aa   : > { %1471 = vst [vmem:[%s2864_s7] sm:$0xff] %v1447_v9  ;;  %v1164_v51 = vadd.f32 %v1094_v12, %v1004_v29  ;;  %v1054_v12 = vld [vmem:[%s1966_s9 + $0xda] sm:$0xff] }
 0x1ab   : > { %v937_v52 = vpop.f32.mrf.mxu1  ;;  %v1224_v53 = vpop.f32.mrf.mxu3 }
 0x1ac   : > { %v1294_v8 = vadd.f32 %v1224_v53, %v1164_v51  ;;  %1401 = vmatmul.f32.gmra.mxu0 %v2869_v46  ;;  %v1005_v5 = vadd.f32 %v937_v52, %v2631_v38  ;;  %v635_v53 = vld [vmem:[%s1966_s9 + $0xe1] sm:$0xff] }
 0x1ae   : > { %v1424_v56 = vadd.f32 %v1354_v54, %v1294_v8  ;;  %984 = vmatmul.f32.gmra.mxu1 %v2663_v57  ;;  %1144 = vmatmul.f32.gmra.mxu2 %v2814_v39 }
 0x1b0   : > { %v1448_v3 = vmax.f32 %v1424_v56, 0.0  ;;  %1274 = vmatmul.f32.gmra.mxu3 %v2845_v30 }
 0x1b1   : > { %v1097_v26 = vpop.f32.mrf.mxu2  ;;  %v1357_v13 = vpop.f32.mrf.mxu0 }
 0x1b2   : > { %1472 = vst [vmem:[%s2864_s7 + $0x8] sm:$0xff] %v1448_v3  ;;  %v1165_v45 = vadd.f32 %v1097_v26, %v1005_v5  ;;  %v1055_v26 = vld [vmem:[%s1966_s9 + $0xe2] sm:$0xff] }
 0x1b3   : > { %v940_v33 = vpop.f32.mrf.mxu1  ;;  %v1227_v55 = vpop.f32.mrf.mxu3 }
 0x1b4   : > { %v1295_v23 = vadd.f32 %v1227_v55, %v1165_v45  ;;  %1404 = vmatmul.f32.gmra.mxu0 %v1051_v41  ;;  %v1006_v38 = vadd.f32 %v940_v33, %v2648_v11  ;;  %v636_v33 = vld [vmem:[%s1966_s9 + $0xe9] sm:$0xff] }
 0x1b6   : > { %v1425_v43 = vadd.f32 %v1357_v13, %v1295_v23  ;;  %987 = vmatmul.f32.gmra.mxu1 %v2673_v2  ;;  %1147 = vmatmul.f32.gmra.mxu2 %v2824_v36 }
 0x1b8   : > { %v1449_v57 = vmax.f32 %v1425_v43, 0.0  ;;  %1277 = vmatmul.f32.gmra.mxu3 %v2856_v25 }
 0x1b9   : > { %v1100_v39 = vpop.f32.mrf.mxu2  ;;  %v1360_v27 = vpop.f32.mrf.mxu0 }
 0x1ba   : > { %1473 = vst [vmem:[%s2864_s7 + $0x10] sm:$0xff] %v1449_v57  ;;  %v1166_v21 = vadd.f32 %v1100_v39, %v1006_v38  ;;  %v1056_v57 = vld [vmem:[%s1966_s9 + $0xea] sm:$0xff] }
 0x1bb   : > { %v943_v63 = vpop.f32.mrf.mxu1  ;;  %v1230_v49 = vpop.f32.mrf.mxu3 }
 0x1bc   : > { %v1296_v4 = vadd.f32 %v1230_v49, %v1166_v21  ;;  %1407 = vmatmul.f32.gmra.mxu0 %v1052_v60  ;;  %v1007_v11 = vadd.f32 %v943_v63, %v2659_v35 }
 0x1be   : > { %v1426_v2 = vadd.f32 %v1360_v27, %v1296_v4  ;;  %990 = vmatmul.f32.gmra.mxu1 %v2683_v16  ;;  %1150 = vmatmul.f32.gmra.mxu2 %v2834_v22 }
 0x1c0   : > { %v1450_v36 = vmax.f32 %v1426_v2, 0.0  ;;  %1280 = vmatmul.f32.gmra.mxu3 %v2869_v46 }
 0x1c1   : > { %v1103_v59 = vpop.f32.mrf.mxu2  ;;  %v1363_v10 = vpop.f32.mrf.mxu0 }
 0x1c2   : > { %1474 = vst [vmem:[%s2864_s7 + $0x18] sm:$0xff] %v1450_v36  ;;  %v1167_v61 = vadd.f32 %v1103_v59, %v1007_v11 }
 0x1c3   : > { %v946_v37 = vpop.f32.mrf.mxu1  ;;  %v1233_v44 = vpop.f32.mrf.mxu3 }
 0x1c4   : > { %v1297_v19 = vadd.f32 %v1233_v44, %v1167_v61  ;;  %1410 = vmatmul.f32.gmra.mxu0 %v1053_v14  ;;  %v1008_v35 = vadd.f32 %v946_v37, %v2669_v58 }
 0x1c6   : > { %v1427_v16 = vadd.f32 %v1363_v10, %v1297_v19  ;;  %993 = vmatmul.f32.gmra.mxu1 %v634_v32  ;;  %1153 = vmatmul.f32.gmra.mxu2 %v2845_v30 }
 0x1c8   : > { %v1451_v22 = vmax.f32 %v1427_v16, 0.0  ;;  %1283 = vmatmul.f32.gmra.mxu3 %v1051_v41 }
 0x1c9   : > { %v1106_v29 = vpop.f32.mrf.mxu2  ;;  %v1366_v9 = vpop.f32.mrf.mxu0 }
 0x1ca   : > { %1475 = vst [vmem:[%s2864_s7 + $0x20] sm:$0xff] %v1451_v22  ;;  %v1168_v54 = vadd.f32 %v1106_v29, %v1008_v35 }
 0x1cb   : > { %v949_v51 = vpop.f32.mrf.mxu1  ;;  %v1236_v52 = vpop.f32.mrf.mxu3 }
 0x1cc   : > { %v1298_v8 = vadd.f32 %v1236_v52, %v1168_v54  ;;  %1413 = vmatmul.f32.gmra.mxu0 %v1054_v12  ;;  %v1009_v58 = vadd.f32 %v949_v51, %v2679_v34 }
 0x1ce   : > { %v1428_v56 = vadd.f32 %v1366_v9, %v1298_v8  ;;  %996 = vmatmul.f32.gmra.mxu1 %v635_v53  ;;  %1156 = vmatmul.f32.gmra.mxu2 %v2856_v25 }
 0x1d0   : > { %v1452_v30 = vmax.f32 %v1428_v56, 0.0  ;;  %1286 = vmatmul.f32.gmra.mxu3 %v1052_v60 }
 0x1d1   : > { %v1109_v5 = vpop.f32.mrf.mxu2  ;;  %v1369_v3 = vpop.f32.mrf.mxu0 }
 0x1d2   : > { %1476 = vst [vmem:[%s2864_s7 + $0x28] sm:$0xff] %v1452_v30  ;;  %v1169_v13 = vadd.f32 %v1109_v5, %v1009_v58 }
 0x1d3   : > { %v952_v41 = vpop.f32.mrf.mxu1  ;;  %v1239_v45 = vpop.f32.mrf.mxu3 }
 0x1d4   : > { %v1299_v55 = vadd.f32 %v1239_v45, %v1169_v13  ;;  %1416 = vmatmul.f32.gmra.mxu0 %v1055_v26  ;;  %v1010_v34 = vadd.f32 %v952_v41, %v2690_v18 }
 0x1d6   : > { %v1429_v23 = vadd.f32 %v1369_v3, %v1299_v55  ;;  %999 = vmatmul.f32.gmra.mxu1 %v636_v33  ;;  %1159 = vmatmul.f32.gmra.mxu2 %v2869_v46 }
 0x1d8   : > { %v1453_v25 = vmax.f32 %v1429_v23, 0.0  ;;  %1289 = vmatmul.f32.gmra.mxu3 %v1053_v14 }
 0x1d9   : > { %v1112_v43 = vpop.f32.mrf.mxu2  ;;  %v1372_v38 = vpop.f32.mrf.mxu0 }
 0x1da   : > { %1477 = vst [vmem:[%s2864_s7 + $0x30] sm:$0xff] %v1453_v25  ;;  %v1170_v39 = vadd.f32 %v1112_v43, %v1010_v34 }
 0x1db   : > { %v955_v27 = vpop.f32.mrf.mxu1  ;;  %v1242_v60 = vpop.f32.mrf.mxu3 }
 0x1dc   : > { %v1300_v21 = vadd.f32 %v1242_v60, %v1170_v39  ;;  %1419 = vmatmul.f32.gmra.mxu0 %v1056_v57  ;;  %v1011_v49 = vadd.f32 %v955_v27, %v2701_v50 }
 0x1de   : > { %v1430_v63 = vadd.f32 %v1372_v38, %v1300_v21 }
 0x1e0   : > { %v1454_v4 = vmax.f32 %v1430_v63, 0.0 }
 0x1e1   : > { %v1115_v46 = vpop.f32.mrf.mxu2  ;;  %v1375_v2 = vpop.f32.mrf.mxu0 }
 0x1e2   : > { %1478 = vst [vmem:[%s2864_s7 + $0x38] sm:$0xff] %v1454_v4  ;;  %v1171_v18 = vadd.f32 %v1115_v46, %v1011_v49 }
 0x1e3   : > { %v958_v11 = vpop.f32.mrf.mxu1  ;;  %v1245_v36 = vpop.f32.mrf.mxu3 }
 0x1e4   : > { %v1301_v59 = vadd.f32 %v1245_v36, %v1171_v18  ;;  %v1012_v14 = vadd.f32 %v958_v11, %v2712_v24 }
 0x1e6   : > { %v1431_v10 = vadd.f32 %v1375_v2, %v1301_v59 }
 0x1e8   : > { %v1455_v61 = vmax.f32 %v1431_v10, 0.0 }
 0x1e9   : > { %v1118_v37 = vpop.f32.mrf.mxu2  ;;  %v1378_v44 = vpop.f32.mrf.mxu0 }
 0x1ea   : > { %1479 = vst [vmem:[%s2864_s7 + $0x40] sm:$0xff] %v1455_v61  ;;  %v1172_v32 = vadd.f32 %v1118_v37, %v1012_v14 }
 0x1eb   : > { %v961_v19 = vpop.f32.mrf.mxu1  ;;  %v1248_v16 = vpop.f32.mrf.mxu3 }
 0x1ec   : > { %v1302_v50 = vadd.f32 %v1248_v16, %v1172_v32  ;;  %v1013_v22 = vadd.f32 %v961_v19, %v2721_v6 }
 0x1ee   : > { %v1432_v35 = vadd.f32 %v1378_v44, %v1302_v50 }
 0x1f0   : > { %v1456_v29 = vmax.f32 %v1432_v35, 0.0 }
 0x1f1   : > { %v1121_v9 = vpop.f32.mrf.mxu2  ;;  %v1381_v12 = vpop.f32.mrf.mxu0 }
 0x1f2   : > { %1480 = vst [vmem:[%s2864_s7 + $0x48] sm:$0xff] %v1456_v29  ;;  %v1173_v54 = vadd.f32 %v1121_v9, %v1013_v22 }
 0x1f3   : > { %v964_v51 = vpop.f32.mrf.mxu1  ;;  %v1251_v52 = vpop.f32.mrf.mxu3 }
 0x1f4   : > { %v1303_v24 = vadd.f32 %v1251_v52, %v1173_v54  ;;  %v1014_v8 = vadd.f32 %v964_v51, %v2729_v48 }
 0x1f6   : > { %v1433_v53 = vadd.f32 %v1381_v12, %v1303_v24 }
 0x1f8   : > { %v1457_v56 = vmax.f32 %v1433_v53, 0.0 }
 0x1f9   : > { %v1124_v58 = vpop.f32.mrf.mxu2  ;;  %v1384_v30 = vpop.f32.mrf.mxu0 }
 0x1fa   : > { %1481 = vst [vmem:[%s2864_s7 + $0x50] sm:$0xff] %v1457_v56  ;;  %v1174_v5 = vadd.f32 %v1124_v58, %v1014_v8 }
 0x1fb   : > { %v967_v3 = vpop.f32.mrf.mxu1  ;;  %v1254_v26 = vpop.f32.mrf.mxu3 }
 0x1fc   : > { %v1304_v6 = vadd.f32 %v1254_v26, %v1174_v5  ;;  %v1015_v41 = vadd.f32 %v967_v3, %v2738_v0 }
 0x1fe   : > { %v1434_v13 = vadd.f32 %v1384_v30, %v1304_v6 }
 0x200   : > { %v1458_v45 = vmax.f32 %v1434_v13, 0.0 }
 0x201   : > { %v1127_v33 = vpop.f32.mrf.mxu2  ;;  %v1387_v55 = vpop.f32.mrf.mxu0 }
 0x202   : > { %1482 = vst [vmem:[%s2864_s7 + $0x58] sm:$0xff] %v1458_v45  ;;  %v1175_v23 = vadd.f32 %v1127_v33, %v1015_v41 }
 0x203   : > { %v970_v34 = vpop.f32.mrf.mxu1  ;;  %v1257_v25 = vpop.f32.mrf.mxu3 }
 0x204   : > { %v1305_v48 = vadd.f32 %v1257_v25, %v1175_v23  ;;  %v1016_v38 = vadd.f32 %v970_v34, %v2747_v7 }
 0x206   : > { %v1435_v43 = vadd.f32 %v1387_v55, %v1305_v48 }
 0x208   : > { %v1459_v57 = vmax.f32 %v1435_v43, 0.0 }
 0x209   : > { %v1130_v39 = vpop.f32.mrf.mxu2  ;;  %v1390_v27 = vpop.f32.mrf.mxu0 }
 0x20a   : > { %1483 = vst [vmem:[%s2864_s7 + $0x60] sm:$0xff] %v1459_v57  ;;  %v1176_v60 = vadd.f32 %v1130_v39, %v1016_v38 }
 0x20b   : > { %v973_v21 = vpop.f32.mrf.mxu1  ;;  %v1260_v63 = vpop.f32.mrf.mxu3 }
 0x20c   : > { %v1306_v0 = vadd.f32 %v1260_v63, %v1176_v60  ;;  %v1017_v4 = vadd.f32 %v973_v21, %v2757_v40 }
 0x20e   : > { %v1436_v49 = vadd.f32 %v1390_v27, %v1306_v0 }
 0x210   : > { %v1460_v46 = vmax.f32 %v1436_v49, 0.0 }
 0x211   : > { %v1133_v2 = vpop.f32.mrf.mxu2  ;;  %v1393_v18 = vpop.f32.mrf.mxu0 }
 0x212   : > { %1484 = vst [vmem:[%s2864_s7 + $0x68] sm:$0xff] %v1460_v46  ;;  %v1177_v11 = vadd.f32 %v1133_v2, %v1017_v4 }
 0x213   : > { %v976_v36 = vpop.f32.mrf.mxu1  ;;  %v1263_v59 = vpop.f32.mrf.mxu3 }
 0x214   : > { %v1307_v7 = vadd.f32 %v1263_v59, %v1177_v11  ;;  %v1018_v14 = vadd.f32 %v976_v36, %v2767_v1 }
 0x216   : > { %v1437_v10 = vadd.f32 %v1393_v18, %v1307_v7 }
 0x218   : > { %v1461_v61 = vmax.f32 %v1437_v10, 0.0 }
 0x219   : > { %v1136_v37 = vpop.f32.mrf.mxu2  ;;  %v1396_v44 = vpop.f32.mrf.mxu0 }
 0x21a   : > { %1485 = vst [vmem:[%s2864_s7 + $0x70] sm:$0xff] %v1461_v61  ;;  %v1178_v32 = vadd.f32 %v1136_v37, %v1018_v14 }
 0x21b   : > { %v979_v19 = vpop.f32.mrf.mxu1  ;;  %v1266_v16 = vpop.f32.mrf.mxu3 }
 0x21c   : > { %v1308_v40 = vadd.f32 %v1266_v16, %v1178_v32  ;;  %v1019_v35 = vadd.f32 %v979_v19, %v2777_v47 }
 0x21e   : > { %v1438_v50 = vadd.f32 %v1396_v44, %v1308_v40 }
 0x220   : > { %v1462_v22 = vmax.f32 %v1438_v50, 0.0 }
 0x221   : > { %v1139_v29 = vpop.f32.mrf.mxu2  ;;  %v1399_v9 = vpop.f32.mrf.mxu0 }
 0x222   : > { %1486 = vst [vmem:[%s2864_s7 + $0x78] sm:$0xff] %v1462_v22  ;;  %v1179_v12 = vadd.f32 %v1139_v29, %v1019_v35 }
 0x223   : > { %v982_v54 = vpop.f32.mrf.mxu1  ;;  %v1269_v51 = vpop.f32.mrf.mxu3 }
 0x224   : > { %v1309_v1 = vadd.f32 %v1269_v51, %v1179_v12  ;;  %v1020_v24 = vadd.f32 %v982_v54, %v2787_v42 }
 0x226   : > { %v1439_v52 = vadd.f32 %v1399_v9, %v1309_v1 }
 0x228   : > { %v1463_v53 = vmax.f32 %v1439_v52, 0.0 }
 0x229   : > { %v1142_v8 = vpop.f32.mrf.mxu2  ;;  %v1402_v56 = vpop.f32.mrf.mxu0 }
 0x22a   : > { %1487 = vst [vmem:[%s2864_s7 + $0x80] sm:$0xff] %v1463_v53  ;;  %v1180_v58 = vadd.f32 %v1142_v8, %v1020_v24 }
 0x22b   : > { %v985_v30 = vpop.f32.mrf.mxu1  ;;  %v1272_v5 = vpop.f32.mrf.mxu3 }
 0x22c   : > { %v1310_v47 = vadd.f32 %v1272_v5, %v1180_v58  ;;  %v1021_v26 = vadd.f32 %v985_v30, %v2797_v31 }
 0x22e   : > { %v1440_v3 = vadd.f32 %v1402_v56, %v1310_v47 }
 0x230   : > { %v1464_v6 = vmax.f32 %v1440_v3, 0.0 }
 0x231   : > { %v1145_v13 = vpop.f32.mrf.mxu2  ;;  %v1405_v41 = vpop.f32.mrf.mxu0 }
 0x232   : > { %1488 = vst [vmem:[%s2864_s7 + $0x88] sm:$0xff] %v1464_v6  ;;  %v1181_v45 = vadd.f32 %v1145_v13, %v1021_v26 }
 0x233   : > { %v988_v33 = vpop.f32.mrf.mxu1  ;;  %v1275_v55 = vpop.f32.mrf.mxu3 }
 0x234   : > { %v1311_v42 = vadd.f32 %v1275_v55, %v1181_v45  ;;  %v1022_v34 = vadd.f32 %v988_v33, %v2807_v15 }
 0x236   : > { %v1441_v23 = vadd.f32 %v1405_v41, %v1311_v42 }
 0x238   : > { %v1465_v25 = vmax.f32 %v1441_v23, 0.0 }
 0x239   : > { %v1148_v48 = vpop.f32.mrf.mxu2  ;;  %v1408_v43 = vpop.f32.mrf.mxu0 }
 0x23a   : > { %1489 = vst [vmem:[%s2864_s7 + $0x90] sm:$0xff] %v1465_v25  ;;  %v1182_v38 = vadd.f32 %v1148_v48, %v1022_v34 }
 0x23b   : > { %v991_v57 = vpop.f32.mrf.mxu1  ;;  %v1278_v39 = vpop.f32.mrf.mxu3 }
 0x23c   : > { %v1312_v31 = vadd.f32 %v1278_v39, %v1182_v38  ;;  %v1023_v60 = vadd.f32 %v991_v57, %v2817_v28 }
 0x23e   : > { %v1442_v27 = vadd.f32 %v1408_v43, %v1312_v31 }
 0x240   : > { %v1466_v21 = vmax.f32 %v1442_v27, 0.0 }
 0x241   : > { %v1151_v63 = vpop.f32.mrf.mxu2  ;;  %v1411_v0 = vpop.f32.mrf.mxu0 }
 0x242   : > { %1490 = vst [vmem:[%s2864_s7 + $0x98] sm:$0xff] %v1466_v21  ;;  %v1183_v49 = vadd.f32 %v1151_v63, %v1023_v60 }
 0x243   : > { %v994_v4 = vpop.f32.mrf.mxu1  ;;  %v1281_v46 = vpop.f32.mrf.mxu3 }
 0x244   : > { %v1313_v15 = vadd.f32 %v1281_v46, %v1183_v49  ;;  %v1024_v18 = vadd.f32 %v994_v4, %v2827_v62 }
 0x246   : > { %v1443_v2 = vadd.f32 %v1411_v0, %v1313_v15 }
 0x248   : > { %v1467_v11 = vmax.f32 %v1443_v2, 0.0 }
 0x249   : > { %v1154_v36 = vpop.f32.mrf.mxu2  ;;  %v1414_v59 = vpop.f32.mrf.mxu0 }
 0x24a   : > { %1491 = vst [vmem:[%s2864_s7 + $0xa0] sm:$0xff] %v1467_v11  ;;  %v1184_v7 = vadd.f32 %v1154_v36, %v1024_v18 }
 0x24b   : > { %v997_v10 = vpop.f32.mrf.mxu1  ;;  %v1284_v14 = vpop.f32.mrf.mxu3 }
 0x24c   : > { %v1314_v28 = vadd.f32 %v1284_v14, %v1184_v7  ;;  %v1025_v37 = vadd.f32 %v997_v10, %v2838_v17 }
 0x24e   : > { %v1444_v61 = vadd.f32 %v1414_v59, %v1314_v28 }
 0x250   : > { %v1468_v44 = vmax.f32 %v1444_v61, 0.0 }
 0x251   : > { %v1157_v32 = vpop.f32.mrf.mxu2  ;;  %v1417_v19 = vpop.f32.mrf.mxu0 }
 0x252   : > { %1492 = vst [vmem:[%s2864_s7 + $0xa8] sm:$0xff] %v1468_v44  ;;  %v1185_v16 = vadd.f32 %v1157_v32, %v1025_v37 }
 0x253   : > { %v1287_v40 = vpop.f32.mrf.mxu3  ;;  %v1000_v50 = vpop.f32.mrf.mxu1 }
 0x254   : > { %v1315_v62 = vadd.f32 %v1287_v40, %v1185_v16  ;;  %v1026_v22 = vadd.f32 %v1000_v50, %v2849_v20 }
 0x256   : > { %v1445_v35 = vadd.f32 %v1417_v19, %v1315_v62 }
 0x258   : > { %v1469_v29 = vmax.f32 %v1445_v35, 0.0 }
 0x259   : > { %v1160_v9 = vpop.f32.mrf.mxu2  ;;  %v1420_v51 = vpop.f32.mrf.mxu0 }
 0x25a   : > { %1493 = vst [vmem:[%s2864_s7 + $0xb0] sm:$0xff] %v1469_v29  ;;  %v1186_v12 = vadd.f32 %v1160_v9, %v1026_v22 }
 0x25b   : > { %v1290_v54 = vpop.f32.mrf.mxu3 }
 0x25c   : > { %v1316_v1 = vadd.f32 %v1290_v54, %v1186_v12 }
 0x25e   : > { %v1446_v17 = vadd.f32 %v1420_v51, %v1316_v1 }
 0x260   : > { %v1470_v52 = vmax.f32 %v1446_v17, 0.0 }
 0x262   : > { %1494 = vst [vmem:[%s2864_s7 + $0xb8] sm:$0xff] %v1470_v52 }
 0x263 PF: > { %s13_s16 = sadd.s32 1, %s1855_s16   ;;  %s2958_s12 = smov %s1847_s14 }
 0x264   : > { %p10_p8 = scmp.ge.s32.totalorder %s13_s16, 6   ;;  %s2959_s13 = smov %s1851_s15 }
 0x265   : > { %s2960_s14 = smov %s2963_s17  ;;  %s2961_s15 = smov %s2967_s18 }
 0x266   :  { %12 = sbr.rel (!%p10_p8) target bundleno = 3 (0x3), region = 70 }

</bundles_post_ra>
